<compile_context>
chip_gen: v5e
topology: v5e:2x2
jax: 0.10.0
libtpu: 0.0.40
codegen_flags: <defaults>
</compile_context>

<pallas_src>
import functools

import jax
import jax.numpy as jnp
from jax.experimental import pallas as pl
from jax.experimental.pallas import tpu as pltpu


GEM_EPS = 1e-6          # eps used in gem(): x.clamp(min=eps)
BN_EPS = 1e-5           # nn.BatchNorm1d default eps
NORM_EPS = 1e-12        # F.normalize default eps


def _round_up(x, m):
    return ((x + m - 1) // m) * m


def _vmem_capacity_bytes():
    """Physical VMEM of the attached TPU; conservative fallback (v7x = 64 MiB)."""
    try:
        return int(pltpu.get_tpu_info().vmem_capacity_bytes)
    except Exception:
        return 64 * 1024 * 1024


def _gem_power(x, p):
    """clamp(x)^p with repeated multiplies when p is a small static integer."""
    if float(p).is_integer() and 1 <= int(p) <= 8:
        n = int(p)
        result = None
        base = x
        while True:
            if n & 1:
                result = base if result is None else result * base
            n >>= 1
            if n == 0:
                return result
            base = base * base
    return jnp.power(x, p)


def _gem_root(x, p):
    """x^(1/p) without a general pow when p is 1/2/4."""
    if p == 1.0:
        return x
    if p == 2.0:
        return jnp.sqrt(x)
    if p == 4.0:
        return jnp.sqrt(jnp.sqrt(x))
    return jnp.power(x, 1.0 / p)


def _fc_bn_l2(pooled, w_ref, bias_ref, o_ref, p):
    """GeM root -> FC (bf16 MXU, BN scale folded) -> folded bias -> L2 norm."""
    g = _gem_root(pooled, p)                                 # (TB, C) f32
    y = jnp.dot(g.astype(w_ref.dtype), w_ref[...],
                preferred_element_type=jnp.float32)          # (TB, Fp) f32 acc
    y = y + bias_ref[...]                                    # folded BN bias
    # F.normalize(y, p=2, dim=1): y / max(||y||, eps) via rsqrt on the EUP.
    ss = jnp.sum(y * y, axis=1, keepdims=True)
    o_ref[...] = (y * jax.lax.rsqrt(jnp.maximum(ss, NORM_EPS * NORM_EPS))
                  ).astype(o_ref.dtype)


def _head_single_kernel(feat_ref, w_ref, bias_ref, o_ref, *, p, s_true):
    """Single spatial chunk per batch tile (ts == S).

    feat_ref : (TB, C, S)  feature tile, spatial on lanes
    w_ref    : (C, Fp)     bf16 fc weight^T with BN scale folded into columns
    bias_ref : (1, Fp)     folded BN bias (f32)
    o_ref    : (TB, Fp)    output tile (f32)
    """
    x = feat_ref[...].astype(jnp.float32)
    xp = _gem_power(jnp.maximum(x, GEM_EPS), p)
    pooled = jnp.sum(xp, axis=2) * (1.0 / s_true)            # one XLU reduce/tile
    _fc_bn_l2(pooled, w_ref, bias_ref, o_ref, p)


def _head_chunked_kernel(feat_ref, w_ref, bias_ref, o_ref, acc_ref,
                         *, p, s_true, ts):
    """Chunked spatial reduction (only used when a full-S tile is too large).

    acc_ref : (TB, C, 128) lane-wide f32 partial sums — per-chunk accumulate is
              pure VPU; the 128->1 cross-lane reduce is done once in the epilogue.
    """
    s_idx = pl.program_id(1)
    is_last = s_idx == pl.num_programs(1) - 1

    @pl.when(s_idx == 0)
    def _():
        acc_ref[...] = jnp.zeros_like(acc_ref)

    x = feat_ref[...].astype(jnp.float32)                    # (TB, C, ts), ts%128==0
    xp = _gem_power(jnp.maximum(x, GEM_EPS), p)

    def lane_partial(v):
        # (TB, C, ts) -> (TB, C, 128) with 128-aligned lane slices: VPU adds only.
        part = v[:, :, 0:128]
        for k in range(1, ts // 128):
            part = part + v[:, :, k * 128:(k + 1) * 128]
        return part

    if s_true % ts != 0:
        # Only the tail (last) chunk pays the iota/compare/select mask.
        @pl.when(jnp.logical_not(is_last))
        def _():
            acc_ref[...] += lane_partial(xp)

        @pl.when(is_last)
        def _():
            lane = jax.lax.broadcasted_iota(jnp.int32, xp.shape, 2)
            xm = jnp.where(s_idx * ts + lane < s_true, xp, 0.0)
            acc_ref[...] += lane_partial(xm)
    else:
        acc_ref[...] += lane_partial(xp)

    @pl.when(is_last)
    def _():
        pooled = jnp.sum(acc_ref[...], axis=2) * (1.0 / s_true)  # single XLU reduce
        _fc_bn_l2(pooled, w_ref, bias_ref, o_ref, p)


def efficientnet_head(x_nchw, fc_weight, bn_gamma, bn_beta, bn_mean, bn_var,
                      *, p, tb=None, ts=None, vmem_tile_budget=None):
    """x_nchw: (B, C, H, W) feature map. fc_weight: (F, C); bn_*: (F,).

    Returns (B, F) float32 = L2-normalized BN(Linear(GeM(x))).
    """
    B, C, H, W = x_nchw.shape
    S = H * W
    F_dim = fc_weight.shape[0]
    F_pad = _round_up(F_dim, 128)

    # (B, C, H, W) -> (B, C, S): contiguous merge, no transpose / cast pass.
    feat = x_nchw.reshape(B, C, S)
    itemsize = feat.dtype.itemsize

    vmem_cap = _vmem_capacity_bytes()
    if vmem_tile_budget is None:
        # Per-buffer feature-tile budget; leaves room for double buffering, the
        # resident weight/bias, the accumulator and outputs.
        vmem_tile_budget = max(2 * 1024 * 1024, vmem_cap // 6)

    # Spatial tile: prefer ts = S (one contiguous DMA per batch tile, ns = 1).
    if ts is None:
        if 8 * C * S * itemsize <= vmem_tile_budget:
            ts = S
        else:
            ts = max(128, (vmem_tile_budget // (8 * C * itemsize)) // 128 * 128)
    ts = min(int(ts), S)
    if ts != S:
        ts = max(128, (ts // 128) * 128)
    ns = pl.cdiv(S, ts)

    # Batch tile: biggest sublane-aligned tb within budget; keep >= 2 tiles on
    # the parallel axis so v7x's two TensorCores both get work.
    if tb is None:
        tile_row_bytes = C * ts * itemsize
        tb = min(128, max(8, int(vmem_tile_budget // tile_row_bytes) // 8 * 8))
        if B > 8:
            tb = min(tb, max(8, ((_round_up(B, 8) // 2) // 8) * 8))
    tb = max(8, _round_up(int(tb), 8))

    B_pad = _round_up(B, tb)
    if B_pad != B:
        feat = jnp.pad(feat, ((0, B_pad - B), (0, 0), (0, 0)))
    nb = B_pad // tb

    # Fold eval-mode BatchNorm1d: scale = gamma/sqrt(var+eps) into the FC
    # weight columns, bias = beta - mean*scale. Weight kept bf16 for the MXU.
    scale = (bn_gamma.astype(jnp.float32)
             * jax.lax.rsqrt(bn_var.astype(jnp.float32) + BN_EPS))
    bias = bn_beta.astype(jnp.float32) - bn_mean.astype(jnp.float32) * scale
    w_t = fc_weight.T.astype(jnp.float32) * scale[None, :]          # (C, F)
    if F_pad != F_dim:
        # Padded columns: zero weight + zero bias -> outputs stay exactly 0 and
        # do not perturb the L2 norm over the real F columns.
        w_t = jnp.pad(w_t, ((0, 0), (0, F_pad - F_dim)))
        bias = jnp.pad(bias, (0, F_pad - F_dim))
    w_t = w_t.astype(jnp.bfloat16)
    bias = bias.reshape(1, F_pad)

    # Explicit VMEM limit from the actual footprint (>= 32 MiB scoped default,
    # <= physical VMEM of this generation).
    feat_tile_bytes = tb * C * ts * itemsize
    acc_bytes = tb * C * 128 * 4 if ns > 1 else 0
    est = (2 * feat_tile_bytes + 2 * C * F_pad * 2 + 2 * F_pad * 4
           + 2 * tb * F_pad * 4 + acc_bytes + 4 * 1024 * 1024)
    vmem_limit = int(min(vmem_cap, max(est, 32 * 1024 * 1024)))

    if ns == 1:
        kernel = functools.partial(_head_single_kernel, p=float(p), s_true=S)
        out = pl.pallas_call(
            kernel,
            out_shape=jax.ShapeDtypeStruct((B_pad, F_pad), jnp.float32),
            grid_spec=pltpu.PrefetchScalarGridSpec(
                num_scalar_prefetch=0,
                grid=(nb,),
                in_specs=[
                    pl.BlockSpec((tb, C, S), lambda i: (i, 0, 0)),
                    pl.BlockSpec((C, F_pad), lambda i: (0, 0)),   # loaded once
                    pl.BlockSpec((1, F_pad), lambda i: (0, 0)),   # loaded once
                ],
                out_specs=pl.BlockSpec((tb, F_pad), lambda i: (i, 0)),
            ),
            compiler_params=pltpu.CompilerParams(
                dimension_semantics=("parallel",),
                vmem_limit_bytes=vmem_limit),
        )(feat, w_t, bias)
    else:
        kernel = functools.partial(_head_chunked_kernel, p=float(p),
                                   s_true=S, ts=ts)
        out = pl.pallas_call(
            kernel,
            out_shape=jax.ShapeDtypeStruct((B_pad, F_pad), jnp.float32),
            grid_spec=pltpu.PrefetchScalarGridSpec(
                num_scalar_prefetch=0,
                grid=(nb, ns),
                in_specs=[
                    pl.BlockSpec((tb, C, ts), lambda i, s: (i, 0, s)),
                    pl.BlockSpec((C, F_pad), lambda i, s: (0, 0)),   # loaded once
                    pl.BlockSpec((1, F_pad), lambda i, s: (0, 0)),   # loaded once
                ],
                out_specs=pl.BlockSpec((tb, F_pad), lambda i, s: (i, 0)),
                scratch_shapes=[pltpu.VMEM((tb, C, 128), jnp.float32)],
            ),
            compiler_params=pltpu.CompilerParams(
                dimension_semantics=("parallel", "arbitrary"),
                vmem_limit_bytes=vmem_limit),
        )(feat, w_t, bias)

    return out[:B, :F_dim]


def _reference(x_nchw, fc_weight, bn_gamma, bn_beta, bn_mean, bn_var, *, p):
    """Pure-JAX reference mirroring the PyTorch forward (eval mode)."""
    x = x_nchw.astype(jnp.float32)
    xp = jnp.power(jnp.maximum(x, GEM_EPS), p)
    pooled = jnp.mean(xp, axis=(2, 3))                      # (B, C)
    g = jnp.power(pooled, 1.0 / p)
    y = g @ fc_weight.T.astype(jnp.float32)
    y = (y - bn_mean) / jnp.sqrt(bn_var + BN_EPS) * bn_gamma + bn_beta
    n = jnp.sqrt(jnp.sum(y * y, axis=1, keepdims=True))
    return y / jnp.maximum(n, NORM_EPS)


if __name__ == "__main__":
    key = jax.random.PRNGKey(0)
    k_x, k_w, k_g, k_b, k_m, k_v = jax.random.split(key, 6)

    # Small stand-in shapes (backbone's last feature map). F=192 exercises the
    # lane padding to 256; S=225 exercises an unaligned full-extent spatial
    # tile; B=16 gives two batch tiles on the parallel axis.
    B, C, H, W = 16, 32, 15, 15
    fc_dim = 192
    eval_p = 4.0   # module in eval mode -> p = eval_p

    # Positive-ish post-activation features.
    x = jax.random.uniform(k_x, (B, C, H, W), jnp.float32, 0.0, 2.0)

    # fc.weight: xavier_normal_, shape (fc_dim, C); BN with non-trivial running
    # stats (as after training) to exercise the folded-BN path.
    xavier_std = (2.0 / (C + fc_dim)) ** 0.5
    fc_weight = jax.random.normal(k_w, (fc_dim, C), jnp.float32) * xavier_std
    bn_gamma = 1.0 + 0.1 * jax.random.normal(k_g, (fc_dim,), jnp.float32)
    bn_beta = 0.05 * jax.random.normal(k_b, (fc_dim,), jnp.float32)
    bn_mean = 0.1 * jax.random.normal(k_m, (fc_dim,), jnp.float32)
    bn_var = jax.random.uniform(k_v, (fc_dim,), jnp.float32, 0.5, 1.5)

    ref = _reference(x, fc_weight, bn_gamma, bn_beta, bn_mean, bn_var, p=eval_p)

    # Default config: ts = S (single contiguous spatial tile), auto tb.
    out = efficientnet_head(x, fc_weight, bn_gamma, bn_beta, bn_mean, bn_var,
                            p=eval_p)
    out = jax.block_until_ready(out)
    assert out.shape == (B, fc_dim)
    assert jnp.allclose(out, ref, atol=2e-3, rtol=1e-2), "mismatch (ts=S path)"

    # Chunked spatial path (lane-wide accumulator + pl.when-gated tail mask).
    out_c = efficientnet_head(x, fc_weight, bn_gamma, bn_beta, bn_mean, bn_var,
                              p=eval_p, tb=8, ts=128)
    out_c = jax.block_until_ready(out_c)
    assert jnp.allclose(out_c, ref, atol=2e-3, rtol=1e-2), "mismatch (chunked path)"

    print("KERNEL_OK")
</pallas_src>

<mosaic_0001>
module attributes {stable_mosaic.version = 11 : i64} {
  func.func @_head_single_kernel(%arg0: i32, %arg1: memref<8x32x225xf32, #tpu.memory_space<vmem>>, %arg2: memref<32x256xbf16, #tpu.memory_space<vmem>>, %arg3: memref<1x256xf32, #tpu.memory_space<vmem>>, %arg4: memref<8x256xf32, #tpu.memory_space<vmem>>) attributes {dimension_semantics = [#tpu.dimension_semantics<parallel>], iteration_bounds = array<i64: 2>, scalar_prefetch = 0 : i64, scratch_operands = 0 : i64, tpu.core_type = #tpu.core_type<tc>, window_params = [{transform_indices = @transform_0, window_bounds = array<i64: 8, 32, 225>}, {pipeline_mode = #tpu.pipeline_mode<synchronous>, transform_indices = @transform_1, window_bounds = array<i64: 32, 256>}, {pipeline_mode = #tpu.pipeline_mode<synchronous>, transform_indices = @transform_2, window_bounds = array<i64: 1, 256>}, {transform_indices = @transform_3, window_bounds = array<i64: 8, 256>}]} {
    %c0 = arith.constant 0 : index
    %c0_0 = arith.constant 0 : index
    %c0_1 = arith.constant 0 : index
    %0 = vector.load %arg1[%c0, %c0_0, %c0_1] : memref<8x32x225xf32, #tpu.memory_space<vmem>>, vector<8x32x225xf32>
    %cst = arith.constant 9.99999997E-7 : f32
    %1 = vector.broadcast %cst : f32 to vector<8x32x225xf32>
    %2 = arith.maximumf %0, %1 : vector<8x32x225xf32>
    %3 = arith.mulf %2, %2 : vector<8x32x225xf32>
    %4 = arith.mulf %3, %3 : vector<8x32x225xf32>
    %cst_2 = arith.constant dense<0.000000e+00> : vector<8x32xf32>
    %5 = vector.multi_reduction <add>, %4, %cst_2 [2] : vector<8x32x225xf32> to vector<8x32xf32>
    %cst_3 = arith.constant 0.00444444455 : f32
    %6 = vector.broadcast %cst_3 : f32 to vector<8x32xf32>
    %7 = arith.mulf %5, %6 : vector<8x32xf32>
    %8 = math.sqrt %7 : vector<8x32xf32>
    %9 = math.sqrt %8 : vector<8x32xf32>
    %10 = arith.truncf %9 : vector<8x32xf32> to vector<8x32xbf16>
    %c0_4 = arith.constant 0 : index
    %c0_5 = arith.constant 0 : index
    %11 = vector.load %arg2[%c0_4, %c0_5] : memref<32x256xbf16, #tpu.memory_space<vmem>>, vector<32x256xbf16>
    %cst_6 = arith.constant dense<0.000000e+00> : vector<8x256xf32>
    %12 = tpu.matmul %10, %11, %cst_6 {dimension_numbers = #tpu.dot_dimension_numbers<[1], [0], [0], [1], [0, 0, 1, 1], [], []>} : vector<8x32xbf16>, vector<32x256xbf16>, vector<8x256xf32> -> vector<8x256xf32>
    %c0_7 = arith.constant 0 : index
    %c0_8 = arith.constant 0 : index
    %13 = vector.load %arg3[%c0_7, %c0_8] : memref<1x256xf32, #tpu.memory_space<vmem>>, vector<1x256xf32>
    %14 = vector.broadcast %13 : vector<1x256xf32> to vector<8x256xf32>
    %15 = arith.addf %12, %14 : vector<8x256xf32>
    %16 = arith.mulf %15, %15 : vector<8x256xf32>
    %cst_9 = arith.constant dense<0.000000e+00> : vector<8xf32>
    %17 = vector.multi_reduction <add>, %16, %cst_9 [1] : vector<8x256xf32> to vector<8xf32>
    %18 = vector.shape_cast %17 : vector<8xf32> to vector<8x1xf32>
    %cst_10 = arith.constant 1.000000e-24 : f32
    %19 = vector.broadcast %cst_10 : f32 to vector<8x1xf32>
    %20 = arith.maximumf %18, %19 : vector<8x1xf32>
    %21 = math.rsqrt %20 : vector<8x1xf32>
    %22 = vector.broadcast %21 : vector<8x1xf32> to vector<8x256xf32>
    %23 = arith.mulf %15, %22 : vector<8x256xf32>
    %c0_11 = arith.constant 0 : index
    %c0_12 = arith.constant 0 : index
    %24 = vector.load %arg4[%c0_11, %c0_12] : memref<8x256xf32, #tpu.memory_space<vmem>>, vector<8x256xf32>
    tpu.vector_store %arg4[%c0_11, %c0_12], %23 {strides = array<i32>} : memref<8x256xf32, #tpu.memory_space<vmem>>, vector<8x256xf32>,
    return
  }
  func.func @transform_0(%arg0: i32) -> (i32, i32, i32) {
    %c0_i32 = arith.constant 0 : i32
    %c0_i32_0 = arith.constant 0 : i32
    %c0_i32_1 = arith.constant 0 : i32
    return %arg0, %c0_i32, %c0_i32_0 : i32, i32, i32
  }
  func.func @transform_1(%arg0: i32) -> (i32, i32) {
    %c0_i32 = arith.constant 0 : i32
    %c0_i32_0 = arith.constant 0 : i32
    %c0_i32_1 = arith.constant 0 : i32
    return %c0_i32, %c0_i32_0 : i32, i32
  }
  func.func @transform_2(%arg0: i32) -> (i32, i32) {
    %c0_i32 = arith.constant 0 : i32
    %c0_i32_0 = arith.constant 0 : i32
    %c0_i32_1 = arith.constant 0 : i32
    return %c0_i32, %c0_i32_0 : i32, i32
  }
  func.func @transform_3(%arg0: i32) -> (i32, i32) {
    %c0_i32 = arith.constant 0 : i32
    %c0_i32_0 = arith.constant 0 : i32
    return %arg0, %c0_i32 : i32, i32
  }
}

</mosaic_0001>

<bundles_post_ra>
// kernel: tpu_custom_call.1
= control target key start
LH: loop header
LB: loop body
LE: loop exit
PB: predicated region body
PF: predicated region fallthrough
CT: control target
= control target key end

     0   :  { %8 = vsyncpa [#allocation3], 0  ;;  %s3707_s0 = inlined_call_operand.hbm [shape: f32[16,32,225], index: 0, kind: input, shape index: {}]   ;;  %s3708_s1 = inlined_call_operand.hbm [shape: bf16[32,256], index: 1, kind: input, shape index: {}]   ;;  %s3709_s2 = inlined_call_operand.hbm [shape: f32[1,256], index: 2, kind: input, shape index: {}]   ;;  %s3710_s3 = inlined_call_operand.hbm [shape: f32[16,256], index: 3, kind: output, shape index: {}]  }
   0x1   :  { %10 = vsyncpa [#allocation3 + $0x1], 0 }
   0x2   :  { %11 = vsyncpa [#allocation6], 0 }
   0x3   :  { %12 = vsyncpa [#allocation4], 0 }
   0x4   :  { %14 = vsyncpa [#allocation4 + $0x1], 0  ;;  %s2172_s12 = smov 0   ;;  %s2174_s13 = smov 0  }
   0x5   :  { %s2176_s14 = smov 0   ;;  %s2178_s15 = smov 0  }
   0x6 LB: > { %s2193_s16 = sadd.s32 4294967295, %s2144_s15   ;;  %s1739_s17 = sadd.s32 4294967294, %s2144_s15   ;;  %s2144_s15 = sphi %s2178_s15, %s3825_s15   ;;  %s2140_s14 = sphi %s2176_s14, %s3824_s14   ;;  %s2136_s13 = sphi %s2174_s13, %s3823_s13   ;;  %s2132_s12 = sphi %s2172_s12, %s3822_s12  }
   0x7   : > { %p40_p0 = scmp.ne.s32.totalorder %s2136_s13, %s2132_s12  ;;  %p41_p1 = scmp.eq.s32.totalorder %s2193_s16, 0 }
   0x8   : > { %p106_p2 = scmp.eq.s32.totalorder %s2193_s16, 1  ;;  %p112_p3 = scmp.eq.s32.totalorder %s1739_s17, 1 }
   0x9   : > { %p2202_p4 = por %p41_p1, %p40_p0  ;;  %p1740_p5 = scmp.ge.s32.totalorder %s2144_s15, 1 }
   0xa   : > { %p2207_p6 = por %p112_p3, %p40_p0  ;;  %p119_p7 = scmp.lt.s32.totalorder %s2144_s15, 3 }
   0xb   : > { %s130_s22 = sshll.u32 %s3708_s1, 4  ;;  %s2146_s24 = smov [#allocation5]   ;;  %s131_s22 = int_to_ptr.hbm [resolvable:$true] %s130_s22 }
   0xc   : > { %p2215_p8 = pnand %p1740_p5, %p119_p7  ;;  %s132_s25 = sshll.u32 %s2146_s24, 4  ;;  %s133_s25 = int_to_ptr.vmem [resolvable:$true] %s132_s25 }
   0xd   : > { %s145_s28 = sshll.u32 %s3709_s2, 4  ;;  %s2147_s29 = smov 128   ;;  %s146_s28 = int_to_ptr.hbm [resolvable:$true] %s145_s28 }
   0xe   : > { %p1795_p9 = pneg %p2215_p8  ;;  %s2148_s30 = smov 8  }
   0xf   : > { %s2149_s4 = smov [#allocation7]   ;;  %s2228_s6 = sadd.s32 1, %s2144_s15  }
  0x10   : > { %p1796_p10 = pnand %p1795_p9, %p41_p1  ;;  %s147_s5 = sshll.u32 %s2149_s4, 4  ;;  %s148_s5 = int_to_ptr.vmem [resolvable:$true] %s147_s5 }
  0x11   : > { %s27_s7 = sadd.s32 1, %s2140_s14  ;;  %s24_s8 = ssub.s32 %s2144_s15, %s2228_s6 }
  0x12   : > { %1798 = dma.hbm_to_vmem [thread:$0]  (!%p1796_p10), %s131_s22, 512, %s133_s25, [#allocation6], %s2147_s29, %s2147_s29, %s2148_s30  }
  0x13   : > { %1801 = dma.hbm_to_vmem [thread:$0]  (!%p1796_p10), %s146_s28, 32, %s148_s5, [#allocation6]  }
  0x14   : > { %p34_p12 = scmp.ne.s32.totalorder %s2140_s14, %s2136_s13  ;;  %p25_p13 = scmp.eq.s32.totalorder %s24_s8, 0 }
  0x15   : > { %p35_p0 = scmp.eq.s32.totalorder %s2144_s15, 0  ;;  %p1812_p5 = scmp.lt.s32.totalorder %s2144_s15, 2 }
  0x16   : > { %p2238_p3 = por %p106_p2, %p34_p12  ;;  %s158_s11 = sand.u32 1, %s2140_s14  }
  0x17   : > { %s2244_s10 = scalar_select %p25_p13, %s2140_s14, %s27_s7  }
  0x18   : > { %p36_p7 = por %p35_p0, %p34_p12  ;;  %s1744_s17 = sshll.u32 %s158_s11, 9 }
  0x19   : > { %s1777_s20 = sshll.u32 %s2144_s15, 9  ;;  %s162_s25 = scalar_lea.vmem [#allocation2], %s1744_s17 }
  0x1a   : > { %s168_s24 = scalar_lea.hbm %s3707_s0, %s1777_s20  ;;  %s171_s26 = sshll.u32 %s162_s25, 4  ;;  %s172_s26 = int_to_ptr.vmem [resolvable:$true] %s171_s26 }
  0x1b   : > { %s169_s27 = sshll.u32 %s168_s24, 4  ;;  %p2251_p2 = pnand %p1812_p5, %p36_p7  ;;  %s170_s27 = int_to_ptr.hbm [resolvable:$true] %s169_s27 }
  0x1c   : > { %s159_s29 = scalar_lea.sflag [#allocation3], %s158_s11  ;;  %s2044_s30 = sshra.s32 %s170_s27, 4  ;;  %s2045_s30 = int_to_ptr.hbm [resolvable:$true] %s2044_s30 }
  0x1d   : > { %s2046_s4 = scalar_lea.hbm %s2045_s30, 512  ;;  %p2048_p10 = pneg %p2251_p2 }
  0x1e   : > { %p2047_p9 = scmp.ne.s32.totalorder %s2045_s30, %s2046_s4  ;;  %s2051_s8 = scalar_lea.hbm %s3707_s0, 1024 }
  0x1f   : > { %p2052_p0 = scmp.lt.s32.totalorder %s2045_s30, %s3707_s0  ;;  %p2053_p5 = scmp.lt.s32.totalorder %s2051_s8, %s2046_s4 }
  0x20   : > { %p2049_p12 = pnand %p2048_p10, %p2047_p9 }
  0x21   : > { %p2054_p7 = por %p2053_p5, %p2052_p0 }
  0x22   : > { %p2050_p13 = pneg %p2049_p12 }
  0x24   : > { %p2055_p11 = pnand %p2054_p7, %p2050_p13 }
  0x26   : > { %2058 = shalt.err (!%p2055_p11)
}
  0x27   : > { %s2150_s11 = smov 256   ;;  %s2151_s21 = smov 16  }
  0x28   : > { %1805 = dma.hbm_to_vmem [thread:$0]  (!%p2251_p2), %s170_s27, 8192, %s172_s26, %s159_s29, %s2150_s11, %s2150_s11, %s2151_s21  }
  0x29   : > { %183 = sbr.rel (%p2215_p8) target bundleno = 697 (0x2b9), region = 32 }
  0x2e   : > { %s2268_s22 = sand.u32 1, %s2136_s13  }
  0x2f   : > { %s1749_s24 = sshll.u32 %s2268_s22, 9  ;;  %s186_s25 = scalar_lea.sflag [#allocation3], %s2268_s22 }
  0x30   : > { %s2272_s30 = scalar_lea.vmem [#allocation2], %s1749_s24 }
  0x31   : > { %2119 = dma.done.wait (%p2202_p4), %s186_s25, 8192  }
  0x32   : > { %2121 = vsyncadd (%p2202_p4), %s186_s25, 4294959104 }
  0x33   : > { %2123 = dma.done.wait (%p41_p1), [#allocation6], 544  }
  0x34   : > { %2125 = vsyncadd (%p41_p1), [#allocation6], 4294966752  ;;  %v233_v0 = vld [vmem:[%s2272_s30 + $0x40] sm:$0xff]  ;;  %v234_v1 = vld [vmem:[%s2272_s30 + $0x48] sm:$0xff]  ;;  %vm481_vm0 = vcmask 793600   ;;  %s1752_s18 = sshll.u32 %s2268_s22, 4 }
  0x35   : > { %v229_v2 = vld [vmem:[%s2272_s30 + $0x20] sm:$0xff]  ;;  %v297_v3 = vmax.f32 %v233_v0, 1e-06  ;;  %v298_v4 = vmax.f32 %v234_v1, 1e-06  ;;  %v230_v5 = vld [vmem:[%s2272_s30 + $0x28] sm:$0xff] }
  0x36   : > { %v225_v6 = vld [vmem:[%s2272_s30] sm:$0xff]  ;;  %v293_v7 = vmax.f32 %v229_v2, 1e-06  ;;  %v294_v8 = vmax.f32 %v230_v5, 1e-06  ;;  %v226_v9 = vld [vmem:[%s2272_s30 + $0x8] sm:$0xff] }
  0x37   : > { %v235_v10 = vld [vmem:[%s2272_s30 + $0x50] sm:$0xff]  ;;  %v361_v11 = vmul.f32 %v297_v3, %v297_v3  ;;  %v362_v12 = vmul.f32 %v298_v4, %v298_v4  ;;  %v289_v13 = vmax.f32 %v225_v6, 1e-06  ;;  %v290_v14 = vmax.f32 %v226_v9, 1e-06  ;;  %v236_v15 = vld [vmem:[%s2272_s30 + $0x58] sm:$0xff] }
  0x38   : > { %v357_v16 = vmul.f32 %v293_v7, %v293_v7  ;;  %v358_v17 = vmul.f32 %v294_v8, %v294_v8  ;;  %v299_v18 = vmax.f32 %v235_v10, 1e-06  ;;  %v300_v19 = vmax.f32 %v236_v15, 1e-06  ;;  %v231_v20 = vld [vmem:[%s2272_s30 + $0x30] sm:$0xff]  ;;  %v232_v29 = vld [vmem:[%s2272_s30 + $0x38] sm:$0xff] }
  0x39   : > { %v425_v21 = vmul.f32 %v361_v11, %v361_v11  ;;  %v426_v22 = vmul.f32 %v362_v12, %v362_v12  ;;  %v353_v23 = vmul.f32 %v289_v13, %v289_v13  ;;  %v354_v24 = vmul.f32 %v290_v14, %v290_v14  ;;  %v227_v34 = vld [vmem:[%s2272_s30 + $0x10] sm:$0xff]  ;;  %v228_v35 = vld [vmem:[%s2272_s30 + $0x18] sm:$0xff]  ;;  %v241_v46 = vld [vmem:[%s2272_s30 + $0x80] sm:$0xff]  ;;  %s1782_s23 = sshll.u32 %s2193_s16, 4  ;;  %s222_s29 = scalar_lea.vmem [#allocation8], %s1752_s18 }
  0x3a   : > { %v421_v25 = vmul.f32 %v357_v16, %v357_v16  ;;  %v422_v26 = vmul.f32 %v358_v17, %v358_v17  ;;  %v363_v27 = vmul.f32 %v299_v18, %v299_v18  ;;  %v364_v28 = vmul.f32 %v300_v19, %v300_v19  ;;  %v239_v40 = vld [vmem:[%s2272_s30 + $0x70] sm:$0xff]  ;;  %v240_v45 = vld [vmem:[%s2272_s30 + $0x78] sm:$0xff]  ;;  %v242_v47 = vld [vmem:[%s2272_s30 + $0x88] sm:$0xff]  ;;  %s1645_s28 = scalar_lea.hbm %s3710_s3, %s1782_s23  ;;  %s1647_s4 = sshll.u32 %s222_s29, 4  ;;  %s1648_s4 = int_to_ptr.vmem [resolvable:$true] %s1647_s4 }
  0x3b   : > { %v498_v30 = vsel %vm481_vm0, %v426_v22, 0.0  ;;  %v417_v31 = vmul.f32 %v353_v23, %v353_v23  ;;  %v418_v32 = vmul.f32 %v354_v24, %v354_v24  ;;  %v295_v33 = vmax.f32 %v231_v20, 1e-06  ;;  %v237_v52 = vld [vmem:[%s2272_s30 + $0x60] sm:$0xff]  ;;  %v238_v60 = vld [vmem:[%s2272_s30 + $0x68] sm:$0xff]  ;;  %v247_v18 = vld [vmem:[%s2272_s30 + $0xb0] sm:$0xff] }
  0x3c   : > { %v499_v36 = vadd.f32 %v498_v30, %v425_v21  ;;  %v490_v37 = vsel %vm481_vm0, %v422_v26, 0.0  ;;  %v427_v38 = vmul.f32 %v363_v27, %v363_v27  ;;  %v428_v39 = vmul.f32 %v364_v28, %v364_v28  ;;  %v245_v9 = vld [vmem:[%s2272_s30 + $0xa0] sm:$0xff]  ;;  %v246_v10 = vld [vmem:[%s2272_s30 + $0xa8] sm:$0xff]  ;;  %v248_v22 = vld [vmem:[%s2272_s30 + $0xb8] sm:$0xff]  ;;  %s1649_s5 = sshll.u32 %s1645_s28, 4  ;;  %s1634_s16 = scalar_lea.sflag [#allocation4], %s2268_s22  ;;  %s1650_s5 = int_to_ptr.hbm [resolvable:$true] %s1649_s5 }
  0x3d   : > { %v491_v41 = vadd.f32 %v490_v37, %v421_v25  ;;  %v482_v42 = vsel %vm481_vm0, %v418_v32, 0.0  ;;  %v296_v43 = vmax.f32 %v232_v29, 1e-06  ;;  %v359_v44 = vmul.f32 %v295_v33, %v295_v33  ;;  %v243_v23 = vld [vmem:[%s2272_s30 + $0x90] sm:$0xff]  ;;  %s2088_s7 = sshra.s32 %s1650_s5, 4  ;;  %s2094_s11 = scalar_lea.hbm %s3710_s3, 32  ;;  %s2089_s7 = int_to_ptr.hbm [resolvable:$true] %s2088_s7 }
  0x3e   : > { %500 = vadd.xlane.f32.xlu1 %v499_v36  ;;  %v483_v48 = vadd.f32 %v482_v42, %v417_v31  ;;  %v502_v49 = vsel %vm481_vm0, %v428_v39, 0.0  ;;  %v291_v50 = vmax.f32 %v227_v34, 1e-06  ;;  %v292_v51 = vmax.f32 %v228_v35, 1e-06  ;;  %v244_v31 = vld [vmem:[%s2272_s30 + $0x98] sm:$0xff]  ;;  %p2095_p11 = scmp.lt.s32.totalorder %s2089_s7, %s3710_s3 }
  0x3f   : > { %492 = vadd.xlane.f32.xlu2 %v491_v41  ;;  %v360_v53 = vmul.f32 %v296_v43, %v296_v43  ;;  %v423_v54 = vmul.f32 %v359_v44, %v359_v44  ;;  %v303_v55 = vmax.f32 %v239_v40, 1e-06  ;;  %v304_v58 = vmax.f32 %v240_v45, 1e-06  ;;  %v252_v35 = vld [vmem:[%s2272_s30 + $0xd8] sm:$0xff]  ;;  %v251_v39 = vld [vmem:[%s2272_s30 + $0xd0] sm:$0xff] }
  0x40   : > { %484 = vadd.xlane.f32.xlu0 %v483_v48  ;;  %v355_v56 = vmul.f32 %v291_v50, %v291_v50  ;;  %v356_v57 = vmul.f32 %v292_v51, %v292_v51  ;;  %v305_v59 = vmax.f32 %v241_v46, 1e-06  ;;  %v503_v61 = vadd.f32 %v502_v49, %v427_v38  ;;  %v253_v44 = vld [vmem:[%s2272_s30 + $0xe0] sm:$0xff]  ;;  %v254_v45 = vld [vmem:[%s2272_s30 + $0xe8] sm:$0xff]  ;;  %s2090_s8 = scalar_lea.hbm %s2089_s7, 16 }
  0x41   : > { %v424_v62 = vmul.f32 %v360_v53, %v360_v53  ;;  %v306_v63 = vmax.f32 %v242_v47, 1e-06  ;;  %v301_v0 = vmax.f32 %v237_v52, 1e-06  ;;  %v367_v3 = vmul.f32 %v303_v55, %v303_v55  ;;  %v250_v49 = vld [vmem:[%s2272_s30 + $0xc8] sm:$0xff]  ;;  %v249_v53 = vld [vmem:[%s2272_s30 + $0xc0] sm:$0xff]  ;;  %p2091_p1 = scmp.ne.s32.totalorder %s2089_s7, %s2090_s8  ;;  %p2096_p2 = scmp.lt.s32.totalorder %s2094_s11, %s2090_s8 }
  0x42   : > { %v419_v1 = vmul.f32 %v355_v56, %v355_v56  ;;  %v420_v2 = vmul.f32 %v356_v57, %v356_v57  ;;  %v368_v4 = vmul.f32 %v304_v58, %v304_v58  ;;  %v369_v6 = vmul.f32 %v305_v59, %v305_v59 }
  0x43   : > { %v494_v5 = vsel %vm481_vm0, %v424_v62, 0.0  ;;  %v370_v7 = vmul.f32 %v306_v63, %v306_v63  ;;  %v302_v8 = vmax.f32 %v238_v60, 1e-06  ;;  %v365_v16 = vmul.f32 %v301_v0, %v301_v0  ;;  %p2092_p4 = pnand %p2091_p1, %p2238_p3  ;;  %p2097_p9 = por %p2096_p2, %p2095_p11 }
  0x44   : > { %v495_v11 = vadd.f32 %v494_v5, %v423_v54  ;;  %v486_v12 = vsel %vm481_vm0, %v420_v2, 0.0  ;;  %v432_v13 = vmul.f32 %v368_v4, %v368_v4  ;;  %v431_v19 = vmul.f32 %v367_v3, %v367_v3  ;;  %v258_v2 = vld [vmem:[%s2272_s30 + $0x108] sm:$0xff]  ;;  %v260_v5 = vld [vmem:[%s2272_s30 + $0x118] sm:$0xff] }
  0x45   : > { %v487_v14 = vadd.f32 %v486_v12, %v419_v1  ;;  %v434_v15 = vmul.f32 %v370_v7, %v370_v7  ;;  %v366_v17 = vmul.f32 %v302_v8, %v302_v8  ;;  %v309_v20 = vmax.f32 %v245_v9, 1e-06  ;;  %p2093_p8 = pneg %p2092_p4 }
  0x46   : > { %504 = vadd.xlane.f32.xlu1 %v503_v61  ;;  %v310_v21 = vmax.f32 %v246_v10, 1e-06  ;;  %v510_v24 = vsel %vm481_vm0, %v432_v13, 0.0  ;;  %v433_v25 = vmul.f32 %v369_v6, %v369_v6  ;;  %v429_v28 = vmul.f32 %v365_v16, %v365_v16  ;;  %v259_v16 = vld [vmem:[%s2272_s30 + $0x110] sm:$0xff] }
  0x47   : > { %496 = vadd.xlane.f32.xlu2 %v495_v11  ;;  %v430_v26 = vmul.f32 %v366_v17, %v366_v17  ;;  %v514_v27 = vsel %vm481_vm0, %v434_v15, 0.0  ;;  %v311_v30 = vmax.f32 %v247_v18, 1e-06  ;;  %v312_v33 = vmax.f32 %v248_v22, 1e-06  ;;  %v257_v11 = vld [vmem:[%s2272_s30 + $0x100] sm:$0xff]  ;;  %p2098_p10 = pnand %p2097_p9, %p2093_p8 }
  0x48   : > { %488 = vadd.xlane.f32.xlu0 %v487_v14  ;;  %v374_v29 = vmul.f32 %v310_v21, %v310_v21  ;;  %v307_v34 = vmax.f32 %v243_v23, 1e-06  ;;  %v511_v36 = vadd.f32 %v510_v24, %v431_v19  ;;  %v373_v37 = vmul.f32 %v309_v20, %v309_v20  ;;  %v256_v18 = vld [vmem:[%s2272_s30 + $0xf8] sm:$0xff]  ;;  %v255_v20 = vld [vmem:[%s2272_s30 + $0xf0] sm:$0xff] }
  0x49   : > { %v506_v32 = vsel %vm481_vm0, %v430_v26, 0.0  ;;  %v515_v40 = vadd.f32 %v514_v27, %v433_v25  ;;  %v375_v41 = vmul.f32 %v311_v30, %v311_v30  ;;  %v376_v42 = vmul.f32 %v312_v33, %v312_v33 }
  0x4a   : > { %v438_v38 = vmul.f32 %v374_v29, %v374_v29  ;;  %v308_v43 = vmax.f32 %v244_v31, 1e-06  ;;  %v507_v46 = vadd.f32 %v506_v32, %v429_v28  ;;  %v371_v47 = vmul.f32 %v307_v34, %v307_v34  ;;  %v264_v32 = vld [vmem:[%s2272_s30 + $0x138] sm:$0xff] }
  0x4b   : > { %v316_v48 = vmax.f32 %v252_v35, 1e-06  ;;  %v440_v50 = vmul.f32 %v376_v42, %v376_v42  ;;  %v315_v52 = vmax.f32 %v251_v39, 1e-06  ;;  %v437_v54 = vmul.f32 %v373_v37, %v373_v37  ;;  %v266_v35 = vld [vmem:[%s2272_s30 + $0x148] sm:$0xff]  ;;  %v263_v42 = vld [vmem:[%s2272_s30 + $0x130] sm:$0xff] }
  0x4c   : > { %v372_v51 = vmul.f32 %v308_v43, %v308_v43  ;;  %v522_v55 = vsel %vm481_vm0, %v438_v38, 0.0  ;;  %v317_v56 = vmax.f32 %v253_v44, 1e-06  ;;  %v318_v57 = vmax.f32 %v254_v45, 1e-06  ;;  %v262_v38 = vld [vmem:[%s2272_s30 + $0x128] sm:$0xff] }
  0x4d   : > { %v439_v58 = vmul.f32 %v375_v41, %v375_v41  ;;  %v380_v60 = vmul.f32 %v316_v48, %v316_v48  ;;  %v314_v61 = vmax.f32 %v250_v49, 1e-06  ;;  %v526_v62 = vsel %vm481_vm0, %v440_v50, 0.0  ;;  %v261_v50 = vld [vmem:[%s2272_s30 + $0x120] sm:$0xff] }
  0x4e   : > { %512 = vadd.xlane.f32.xlu1 %v511_v36  ;;  %v436_v59 = vmul.f32 %v372_v51, %v372_v51  ;;  %v435_v63 = vmul.f32 %v371_v47, %v371_v47  ;;  %v382_v0 = vmul.f32 %v318_v57, %v318_v57  ;;  %v313_v1 = vmax.f32 %v249_v53, 1e-06  ;;  %v265_v47 = vld [vmem:[%s2272_s30 + $0x140] sm:$0xff] }
  0x4f   : > { %516 = vadd.xlane.f32.xlu2 %v515_v40  ;;  %v378_v4 = vmul.f32 %v314_v61, %v314_v61  ;;  %v523_v6 = vadd.f32 %v522_v55, %v437_v54  ;;  %v379_v7 = vmul.f32 %v315_v52, %v315_v52  ;;  %v381_v8 = vmul.f32 %v317_v56, %v317_v56 }
  0x50   : > { %508 = vadd.xlane.f32.xlu0 %v507_v46  ;;  %v518_v3 = vsel %vm481_vm0, %v436_v59, 0.0  ;;  %v527_v9 = vadd.f32 %v526_v62, %v439_v58  ;;  %v444_v10 = vmul.f32 %v380_v60, %v380_v60  ;;  %v322_v12 = vmax.f32 %v258_v2, 1e-06  ;;  %v270_v62 = vld [vmem:[%s2272_s30 + $0x168] sm:$0xff] }
  0x51   : > { %v519_v13 = vadd.f32 %v518_v3, %v435_v63  ;;  %v446_v14 = vmul.f32 %v382_v0, %v382_v0  ;;  %v377_v15 = vmul.f32 %v313_v1, %v313_v1  ;;  %v324_v17 = vmax.f32 %v260_v5, 1e-06  ;;  %v272_v1 = vld [vmem:[%s2272_s30 + $0x178] sm:$0xff] }
  0x52   : > { %v442_v19 = vmul.f32 %v378_v4, %v378_v4  ;;  %v443_v21 = vmul.f32 %v379_v7, %v379_v7  ;;  %v445_v22 = vmul.f32 %v381_v8, %v381_v8  ;;  %v321_v23 = vmax.f32 %v257_v11, 1e-06  ;;  %v268_v4 = vld [vmem:[%s2272_s30 + $0x158] sm:$0xff]  ;;  %v269_v8 = vld [vmem:[%s2272_s30 + $0x160] sm:$0xff] }
  0x53   : > { %v534_v24 = vsel %vm481_vm0, %v444_v10, 0.0  ;;  %v386_v25 = vmul.f32 %v322_v12, %v322_v12  ;;  %v323_v26 = vmax.f32 %v259_v16, 1e-06  ;;  %v320_v27 = vmax.f32 %v256_v18, 1e-06  ;;  %v267_v16 = vld [vmem:[%s2272_s30 + $0x150] sm:$0xff] }
  0x54   : > { %v538_v28 = vsel %vm481_vm0, %v446_v14, 0.0  ;;  %v441_v29 = vmul.f32 %v377_v15, %v377_v15  ;;  %v388_v30 = vmul.f32 %v324_v17, %v324_v17  ;;  %v319_v31 = vmax.f32 %v255_v20, 1e-06 }
  0x55   : > { %v530_v33 = vsel %vm481_vm0, %v442_v19, 0.0  ;;  %v384_v34 = vmul.f32 %v320_v27, %v320_v27  ;;  %v535_v36 = vadd.f32 %v534_v24, %v443_v21  ;;  %v385_v37 = vmul.f32 %v321_v23, %v321_v23 }
  0x56   : > { %524 = vadd.xlane.f32.xlu1 %v523_v6  ;;  %v539_v39 = vadd.f32 %v538_v28, %v445_v22  ;;  %v450_v40 = vmul.f32 %v386_v25, %v386_v25  ;;  %v387_v41 = vmul.f32 %v323_v26, %v323_v26  ;;  %v328_v43 = vmax.f32 %v264_v32, 1e-06  ;;  %v276_v28 = vld [vmem:[%s2272_s30 + $0x198] sm:$0xff] }
  0x57   : > { %528 = vadd.xlane.f32.xlu2 %v527_v9  ;;  %v531_v44 = vadd.f32 %v530_v33, %v441_v29  ;;  %v452_v45 = vmul.f32 %v388_v30, %v388_v30  ;;  %v383_v46 = vmul.f32 %v319_v31, %v319_v31  ;;  %v330_v48 = vmax.f32 %v266_v35, 1e-06  ;;  %v278_v31 = vld [vmem:[%s2272_s30 + $0x1a8] sm:$0xff] }
  0x58   : > { %520 = vadd.xlane.f32.xlu0 %v519_v13  ;;  %v448_v49 = vmul.f32 %v384_v34, %v384_v34  ;;  %v326_v51 = vmax.f32 %v262_v38, 1e-06  ;;  %v449_v52 = vmul.f32 %v385_v37, %v385_v37  ;;  %v327_v53 = vmax.f32 %v263_v42, 1e-06  ;;  %v271_v13 = vld [vmem:[%s2272_s30 + $0x170] sm:$0xff]  ;;  %v274_v34 = vld [vmem:[%s2272_s30 + $0x188] sm:$0xff] }
  0x59   : > { %v546_v54 = vsel %vm481_vm0, %v450_v40, 0.0  ;;  %v451_v55 = vmul.f32 %v387_v41, %v387_v41  ;;  %v392_v56 = vmul.f32 %v328_v43, %v328_v43  ;;  %v329_v57 = vmax.f32 %v265_v47, 1e-06  ;;  %v275_v38 = vld [vmem:[%s2272_s30 + $0x190] sm:$0xff]  ;;  %v277_v43 = vld [vmem:[%s2272_s30 + $0x1a0] sm:$0xff] }
  0x5a   : > { %v550_v58 = vsel %vm481_vm0, %v452_v45, 0.0  ;;  %v447_v59 = vmul.f32 %v383_v46, %v383_v46  ;;  %v394_v60 = vmul.f32 %v330_v48, %v330_v48  ;;  %v325_v61 = vmax.f32 %v261_v50, 1e-06  ;;  %v273_v46 = vld [vmem:[%s2272_s30 + $0x180] sm:$0xff] }
  0x5b   : > { %v542_v63 = vsel %vm481_vm0, %v448_v49, 0.0  ;;  %v390_v0 = vmul.f32 %v326_v51, %v326_v51  ;;  %v547_v2 = vadd.f32 %v546_v54, %v449_v52  ;;  %v391_v3 = vmul.f32 %v327_v53, %v327_v53 }
  0x5c   : > { %v551_v5 = vadd.f32 %v550_v58, %v451_v55  ;;  %v456_v6 = vmul.f32 %v392_v56, %v392_v56  ;;  %v393_v7 = vmul.f32 %v329_v57, %v329_v57  ;;  %v334_v9 = vmax.f32 %v270_v62, 1e-06  ;;  %v282_v58 = vld [vmem:[%s2272_s30 + $0x1c8] sm:$0xff] }
  0x5d   : > { %v543_v10 = vadd.f32 %v542_v63, %v447_v59  ;;  %v458_v11 = vmul.f32 %v394_v60, %v394_v60  ;;  %v389_v12 = vmul.f32 %v325_v61, %v325_v61  ;;  %v336_v14 = vmax.f32 %v272_v1, 1e-06  ;;  %v284_v61 = vld [vmem:[%s2272_s30 + $0x1d8] sm:$0xff] }
  0x5e   : > { %536 = vadd.xlane.f32.xlu1 %v535_v36  ;;  %v454_v15 = vmul.f32 %v390_v0, %v390_v0  ;;  %v332_v17 = vmax.f32 %v268_v4, 1e-06  ;;  %v455_v18 = vmul.f32 %v391_v3, %v391_v3  ;;  %v333_v19 = vmax.f32 %v269_v8, 1e-06  ;;  %v280_v0 = vld [vmem:[%s2272_s30 + $0x1b8] sm:$0xff]  ;;  %v281_v4 = vld [vmem:[%s2272_s30 + $0x1c0] sm:$0xff] }
  0x5f   : > { %540 = vadd.xlane.f32.xlu2 %v539_v39  ;;  %v558_v20 = vsel %vm481_vm0, %v456_v6, 0.0  ;;  %v457_v21 = vmul.f32 %v393_v7, %v393_v7  ;;  %v398_v22 = vmul.f32 %v334_v9, %v334_v9  ;;  %v335_v23 = vmax.f32 %v271_v13, 1e-06  ;;  %v283_v9 = vld [vmem:[%s2272_s30 + $0x1d0] sm:$0xff] }
  0x60   : > { %532 = vadd.xlane.f32.xlu0 %v531_v44  ;;  %v562_v24 = vsel %vm481_vm0, %v458_v11, 0.0  ;;  %v453_v25 = vmul.f32 %v389_v12, %v389_v12  ;;  %v400_v26 = vmul.f32 %v336_v14, %v336_v14  ;;  %v331_v27 = vmax.f32 %v267_v16, 1e-06  ;;  %v279_v12 = vld [vmem:[%s2272_s30 + $0x1b0] sm:$0xff] }
  0x61   : > { %v554_v29 = vsel %vm481_vm0, %v454_v15, 0.0  ;;  %v396_v30 = vmul.f32 %v332_v17, %v332_v17  ;;  %v559_v32 = vadd.f32 %v558_v20, %v455_v18  ;;  %v397_v33 = vmul.f32 %v333_v19, %v333_v19 }
  0x62   : > { %v563_v35 = vadd.f32 %v562_v24, %v457_v21  ;;  %v462_v36 = vmul.f32 %v398_v22, %v398_v22  ;;  %v399_v37 = vmul.f32 %v335_v23, %v335_v23  ;;  %v340_v39 = vmax.f32 %v276_v28, 1e-06  ;;  %v288_v24 = vld [vmem:[%s2272_s30 + $0x1f8] sm:$0xff] }
  0x63   : > { %v555_v40 = vadd.f32 %v554_v29, %v453_v25  ;;  %v464_v41 = vmul.f32 %v400_v26, %v400_v26  ;;  %v395_v42 = vmul.f32 %v331_v27, %v331_v27  ;;  %v342_v44 = vmax.f32 %v278_v31, 1e-06  ;;  %v286_v29 = vld [vmem:[%s2272_s30 + $0x1e8] sm:$0xff] }
  0x64   : > { %v460_v45 = vmul.f32 %v396_v30, %v396_v30  ;;  %v338_v47 = vmax.f32 %v274_v34, 1e-06  ;;  %v461_v48 = vmul.f32 %v397_v33, %v397_v33  ;;  %v339_v49 = vmax.f32 %v275_v38, 1e-06  ;;  %v287_v33 = vld [vmem:[%s2272_s30 + $0x1f0] sm:$0xff] }
  0x65   : > { %v570_v50 = vsel %vm481_vm0, %v462_v36, 0.0  ;;  %v463_v51 = vmul.f32 %v399_v37, %v399_v37  ;;  %v404_v52 = vmul.f32 %v340_v39, %v340_v39  ;;  %v341_v53 = vmax.f32 %v277_v43, 1e-06  ;;  %v285_v39 = vld [vmem:[%s2272_s30 + $0x1e0] sm:$0xff] }
  0x66   : > { %548 = vadd.xlane.f32.xlu1 %v547_v2  ;;  %v574_v54 = vsel %vm481_vm0, %v464_v41, 0.0  ;;  %v459_v55 = vmul.f32 %v395_v42, %v395_v42  ;;  %v406_v56 = vmul.f32 %v342_v44, %v342_v44  ;;  %v337_v57 = vmax.f32 %v273_v46, 1e-06 }
  0x67   : > { %552 = vadd.xlane.f32.xlu2 %v551_v5  ;;  %v566_v59 = vsel %vm481_vm0, %v460_v45, 0.0  ;;  %v402_v60 = vmul.f32 %v338_v47, %v338_v47  ;;  %v571_v62 = vadd.f32 %v570_v50, %v461_v48  ;;  %v403_v63 = vmul.f32 %v339_v49, %v339_v49 }
  0x68   : > { %544 = vadd.xlane.f32.xlu0 %v543_v10  ;;  %v575_v1 = vadd.f32 %v574_v54, %v463_v51  ;;  %v468_v2 = vmul.f32 %v404_v52, %v404_v52  ;;  %v405_v3 = vmul.f32 %v341_v53, %v341_v53  ;;  %v346_v5 = vmax.f32 %v282_v58, 1e-06 }
  0x69   : > { %v567_v6 = vadd.f32 %v566_v59, %v459_v55  ;;  %v470_v7 = vmul.f32 %v406_v56, %v406_v56  ;;  %v401_v8 = vmul.f32 %v337_v57, %v337_v57  ;;  %v348_v10 = vmax.f32 %v284_v61, 1e-06 }
  0x6a   : > { %v466_v11 = vmul.f32 %v402_v60, %v402_v60  ;;  %v344_v13 = vmax.f32 %v280_v0, 1e-06  ;;  %v467_v14 = vmul.f32 %v403_v63, %v403_v63  ;;  %v345_v15 = vmax.f32 %v281_v4, 1e-06 }
  0x6b   : > { %v582_v16 = vsel %vm481_vm0, %v468_v2, 0.0  ;;  %v469_v17 = vmul.f32 %v405_v3, %v405_v3  ;;  %v410_v18 = vmul.f32 %v346_v5, %v346_v5  ;;  %v347_v19 = vmax.f32 %v283_v9, 1e-06 }
  0x6c   : > { %v586_v20 = vsel %vm481_vm0, %v470_v7, 0.0  ;;  %v465_v21 = vmul.f32 %v401_v8, %v401_v8  ;;  %v412_v22 = vmul.f32 %v348_v10, %v348_v10  ;;  %v343_v23 = vmax.f32 %v279_v12, 1e-06 }
  0x6d   : > { %v578_v25 = vsel %vm481_vm0, %v466_v11, 0.0  ;;  %v408_v26 = vmul.f32 %v344_v13, %v344_v13  ;;  %v583_v27 = vadd.f32 %v582_v16, %v467_v14  ;;  %v409_v28 = vmul.f32 %v345_v15, %v345_v15 }
  0x6e   : > { %560 = vadd.xlane.f32.xlu1 %v559_v32  ;;  %v587_v30 = vadd.f32 %v586_v20, %v469_v17  ;;  %v474_v31 = vmul.f32 %v410_v18, %v410_v18  ;;  %v411_v32 = vmul.f32 %v347_v19, %v347_v19  ;;  %v352_v34 = vmax.f32 %v288_v24, 1e-06 }
  0x6f   : > { %564 = vadd.xlane.f32.xlu2 %v563_v35  ;;  %v579_v35 = vadd.f32 %v578_v25, %v465_v21  ;;  %v476_v36 = vmul.f32 %v412_v22, %v412_v22  ;;  %v407_v37 = vmul.f32 %v343_v23, %v343_v23  ;;  %v472_v38 = vmul.f32 %v408_v26, %v408_v26 }
  0x70   : > { %556 = vadd.xlane.f32.xlu0 %v555_v40  ;;  %v350_v40 = vmax.f32 %v286_v29, 1e-06  ;;  %v473_v41 = vmul.f32 %v409_v28, %v409_v28  ;;  %v351_v42 = vmax.f32 %v287_v33, 1e-06  ;;  %v594_v43 = vsel %vm481_vm0, %v474_v31, 0.0 }
  0x71   : > { %v475_v44 = vmul.f32 %v411_v32, %v411_v32  ;;  %v416_v45 = vmul.f32 %v352_v34, %v352_v34  ;;  %v598_v46 = vsel %vm481_vm0, %v476_v36, 0.0  ;;  %v471_v47 = vmul.f32 %v407_v37, %v407_v37 }
  0x72   : > { %v349_v48 = vmax.f32 %v285_v39, 1e-06  ;;  %v590_v49 = vsel %vm481_vm0, %v472_v38, 0.0  ;;  %v414_v50 = vmul.f32 %v350_v40, %v350_v40  ;;  %v595_v51 = vadd.f32 %v594_v43, %v473_v41 }
  0x73   : > { %v415_v52 = vmul.f32 %v351_v42, %v351_v42  ;;  %v599_v53 = vadd.f32 %v598_v46, %v475_v44  ;;  %v480_v54 = vmul.f32 %v416_v45, %v416_v45  ;;  %v591_v55 = vadd.f32 %v590_v49, %v471_v47 }
  0x74   : > { %v413_v56 = vmul.f32 %v349_v48, %v349_v48  ;;  %v478_v57 = vmul.f32 %v414_v50, %v414_v50 }
  0x75   : > { %v479_v58 = vmul.f32 %v415_v52, %v415_v52  ;;  %v606_v59 = vsel %vm481_vm0, %v480_v54, 0.0 }
  0x76   : > { %572 = vadd.xlane.f32.xlu1 %v571_v62  ;;  %v477_v60 = vmul.f32 %v413_v56, %v413_v56  ;;  %v602_v61 = vsel %vm481_vm0, %v478_v57, 0.0 }
  0x77   : > { %576 = vadd.xlane.f32.xlu2 %v575_v1  ;;  %v607_v62 = vadd.f32 %v606_v59, %v479_v58 }
  0x78   : > { %568 = vadd.xlane.f32.xlu0 %v567_v6  ;;  %v603_v63 = vadd.f32 %v602_v61, %v477_v60 }
  0x7e   : > { %584 = vadd.xlane.f32.xlu1 %v583_v27 }
  0x7f   : > { %588 = vadd.xlane.f32.xlu2 %v587_v30 }
  0x80   : > { %580 = vadd.xlane.f32.xlu0 %v579_v35 }
  0x86   : > { %596 = vadd.xlane.f32.xlu1 %v595_v51 }
  0x87   : > { %600 = vadd.xlane.f32.xlu2 %v599_v53 }
  0x88   : > { %592 = vadd.xlane.f32.xlu0 %v591_v55 }
  0x8e   : > { %608 = vadd.xlane.f32.xlu1 %v607_v62 }
  0x90   : > { %604 = vadd.xlane.f32.xlu0 %v603_v63 }
  0xb1   : > { %v501_v0 = vpop.xlane.xlu1 %500 }
  0xb2   : > { %v2378_v1 = vmul.f32 0.0044444446, %v501_v0  ;;  %v493_v2 = vpop.xlane.xlu2 %492 }
  0xb3   : > { %v485_v3 = vpop.xlane.xlu0 %484  ;;  %v2381_v4 = vmul.f32 0.0044444446, %v493_v2 }
  0xb4   : > { %1854 = vrsqrt.f32 %v2378_v1  ;;  %v2383_v5 = vmul.f32 0.0044444446, %v485_v3  ;;  %vm697_vm1 = vcmp.eq.f32.partialorder %v2378_v1, inf  ;;  %v700_v53 = vand.u32 2147483648, %v2378_v1 }
  0xb5   : > { %vm699_vm2 = vcmp.eq.f32.partialorder %v2378_v1, 0.0  ;;  %vm673_vm8 = vcmp.eq.f32.partialorder %v2381_v4, inf  ;;  %vm675_vm10 = vcmp.eq.f32.partialorder %v2381_v4, 0.0 }
  0xb6   : > { %1856 = vrsqrt.f32 %v2383_v5  ;;  %vm649_vm3 = vcmp.eq.f32.partialorder %v2383_v5, inf  ;;  %v652_v62 = vand.u32 2147483648, %v2383_v5  ;;  %vm651_vm4 = vcmp.eq.f32.partialorder %v2383_v5, 0.0 }
  0xb7   : > { %1858 = vrsqrt.f32 %v2381_v4 }
  0xb9   : > { %v505_v6 = vpop.xlane.xlu1 %504 }
  0xba   : > { %v1855_v7 = vpop.eup %1854  ;;  %v2387_v8 = vmul.f32 0.0044444446, %v505_v6  ;;  %v497_v9 = vpop.xlane.xlu2 %496 }
  0xbb   : > { %v691_v10 = vmul.f32 %v1855_v7, %v2378_v1  ;;  %v2390_v11 = vmul.f32 0.0044444446, %v497_v9  ;;  %v489_v12 = vpop.xlane.xlu0 %488 }
  0xbc   : > { %1860 = vrsqrt.f32 %v2387_v8  ;;  %v1857_v14 = vpop.eup %1856  ;;  %v2394_v15 = vmul.f32 0.0044444446, %v489_v12  ;;  %vm709_vm5 = vcmp.eq.f32.partialorder %v2387_v8, inf  ;;  %v712_v12 = vand.u32 2147483648, %v2387_v8 }
  0xbd   : > { %v692_v13 = vmul.f32 %v1855_v7, %v691_v10  ;;  %1862 = vrsqrt.f32 %v2390_v11  ;;  %v1859_v16 = vpop.eup %1858  ;;  %v643_v18 = vmul.f32 %v1857_v14, %v2383_v5  ;;  %vm711_vm6 = vcmp.eq.f32.partialorder %v2387_v8, 0.0 }
  0xbe   : > { %1864 = vrsqrt.f32 %v2394_v15  ;;  %v667_v23 = vmul.f32 %v1859_v16, %v2381_v4  ;;  %vm661_vm7 = vcmp.eq.f32.partialorder %v2394_v15, inf  ;;  %vm663_vm9 = vcmp.eq.f32.partialorder %v2394_v15, 0.0 }
  0xbf   : > { %v693_v17 = vmul.f32 0.5, %v692_v13  ;;  %v644_v20 = vmul.f32 %v1857_v14, %v643_v18  ;;  %vm685_vm11 = vcmp.eq.f32.partialorder %v2390_v11, inf  ;;  %vm687_vm12 = vcmp.eq.f32.partialorder %v2390_v11, 0.0 }
  0xc0   : > { %v668_v35 = vmul.f32 %v1859_v16, %v667_v23 }
  0xc1   : > { %v694_v19 = vsub.f32 1.5, %v693_v17  ;;  %v513_v21 = vpop.xlane.xlu1 %512  ;;  %v645_v28 = vmul.f32 0.5, %v644_v20 }
  0xc2   : > { %v1861_v22 = vpop.eup %1860  ;;  %v2399_v24 = vmul.f32 0.0044444446, %v513_v21  ;;  %v517_v25 = vpop.xlane.xlu2 %516  ;;  %v669_v45 = vmul.f32 0.5, %v668_v35 }
  0xc3   : > { %v2401_v26 = vpop.eup %1862  ;;  %v695_v27 = vmul.f32 %v1855_v7, %v694_v19  ;;  %v703_v29 = vmul.f32 %v1861_v22, %v2387_v8  ;;  %v2404_v30 = vmul.f32 0.0044444446, %v517_v25  ;;  %v646_v31 = vsub.f32 1.5, %v645_v28  ;;  %v509_v41 = vpop.xlane.xlu0 %508 }
  0xc4   : > { %1866 = vrsqrt.f32 %v2399_v24  ;;  %v1865_v33 = vpop.eup %1864  ;;  %v679_v36 = vmul.f32 %v2401_v26, %v2390_v11  ;;  %v2420_v51 = vmul.f32 0.0044444446, %v509_v41  ;;  %v670_v56 = vsub.f32 1.5, %v669_v45 }
  0xc5   : > { %v704_v32 = vmul.f32 %v1861_v22, %v703_v29  ;;  %v696_v34 = vmul.f32 %v695_v27, %v2378_v1  ;;  %v647_v37 = vmul.f32 %v1857_v14, %v646_v31  ;;  %v655_v39 = vmul.f32 %v1865_v33, %v2394_v15 }
  0xc6   : > { %1868 = vrsqrt.f32 %v2404_v30  ;;  %v680_v47 = vmul.f32 %v2401_v26, %v679_v36  ;;  %v664_v25 = vand.u32 2147483648, %v2394_v15  ;;  %vm733_vm13 = vcmp.eq.f32.partialorder %v2399_v24, inf }
  0xc7   : > { %v705_v38 = vmul.f32 0.5, %v704_v32  ;;  %v656_v43 = vmul.f32 %v1865_v33, %v655_v39  ;;  %v698_v44 = vsel %vm697_vm1, %v2378_v1, %v696_v34  ;;  %v648_v46 = vmul.f32 %v647_v37, %v2383_v5 }
  0xc8   : > { %v2427_v55 = vsel %vm699_vm2, %v700_v53, %v698_v44  ;;  %v681_v58 = vmul.f32 0.5, %v680_v47  ;;  %1870 = vrsqrt.f32 %v2420_v51  ;;  %v671_v1 = vmul.f32 %v1859_v16, %v670_v56 }
  0xc9   : > { %v706_v40 = vsub.f32 1.5, %v705_v38  ;;  %v657_v49 = vmul.f32 0.5, %v656_v43  ;;  %v650_v57 = vsel %vm649_vm3, %v2383_v5, %v648_v46  ;;  %1872 = vrsqrt.f32 %v2427_v55  ;;  %v525_v0 = vpop.xlane.xlu1 %524 }
  0xca   : > { %v2412_v42 = vpop.eup %1866  ;;  %v2438_v2 = vsel %vm651_vm4, %v652_v62, %v650_v57  ;;  %v682_v3 = vsub.f32 1.5, %v681_v58  ;;  %v529_v6 = vpop.xlane.xlu2 %528  ;;  %v2444_v13 = vmul.f32 0.0044444446, %v525_v0  ;;  %v672_v16 = vmul.f32 %v671_v1, %v2381_v4 }
  0xcb   : > { %v707_v48 = vmul.f32 %v1861_v22, %v706_v40  ;;  %v727_v50 = vmul.f32 %v2412_v42, %v2399_v24  ;;  %v658_v54 = vsub.f32 1.5, %v657_v49  ;;  %1874 = vrsqrt.f32 %v2438_v2 }
  0xcc   : > { %v2422_v52 = vpop.eup %1868  ;;  %v683_v18 = vmul.f32 %v2401_v26, %v682_v3  ;;  %v2455_v19 = vmul.f32 0.0044444446, %v529_v6  ;;  %1876 = vrsqrt.f32 %v2444_v13  ;;  %v521_v26 = vpop.xlane.xlu0 %520  ;;  %v674_v28 = vsel %vm673_vm8, %v2381_v4, %v672_v16 }
  0xcd   : > { %v708_v59 = vmul.f32 %v707_v48, %v2387_v8  ;;  %v728_v60 = vmul.f32 %v2412_v42, %v727_v50  ;;  %v739_v61 = vmul.f32 %v2422_v52, %v2404_v30  ;;  %v659_v63 = vmul.f32 %v1865_v33, %v658_v54 }
  0xce   : > { %v2446_v14 = vpop.eup %1870  ;;  %v684_v29 = vmul.f32 %v683_v18, %v2390_v11  ;;  %v676_v32 = vand.u32 2147483648, %v2381_v4  ;;  %v688_v40 = vand.u32 2147483648, %v2390_v11  ;;  %v2491_v43 = vmul.f32 0.0044444446, %v521_v26 }
  0xcf   : > { %v710_v7 = vsel %vm709_vm5, %v2387_v8, %v708_v59  ;;  %v729_v9 = vmul.f32 0.5, %v728_v60  ;;  %v740_v10 = vmul.f32 %v2422_v52, %v739_v61  ;;  %v660_v5 = vmul.f32 %v659_v63, %v2394_v15  ;;  %v2457_v20 = vpop.eup %1872 }
  0xd0   : > { %v2452_v17 = vsel %vm711_vm6, %v712_v12, %v710_v7  ;;  %v715_v23 = vmul.f32 %v2446_v14, %v2420_v51  ;;  %v1075_v27 = vmul.f32 %v2457_v20, %v2427_v55  ;;  %v2481_v39 = vsel %vm675_vm10, %v676_v32, %v674_v28 }
  0xd1   : > { %v730_v21 = vsub.f32 1.5, %v729_v9  ;;  %v741_v22 = vmul.f32 0.5, %v740_v10  ;;  %1878 = vrsqrt.f32 %v2452_v17  ;;  %v662_v8 = vsel %vm661_vm7, %v2394_v15, %v660_v5  ;;  %v2472_v31 = vpop.eup %1874  ;;  %v537_v35 = vpop.xlane.xlu1 %536 }
  0xd2   : > { %1880 = vrsqrt.f32 %v2455_v19  ;;  %v2478_v36 = vsel %vm663_vm9, %v664_v25, %v662_v8  ;;  %v716_v37 = vmul.f32 %v2446_v14, %v715_v23  ;;  %v541_v38 = vpop.xlane.xlu2 %540  ;;  %v2485_v41 = vpop.eup %1876  ;;  %v1076_v15 = vmul.f32 %v2457_v20, %v1075_v27 }
  0xd3   : > { %v731_v33 = vmul.f32 %v2412_v42, %v730_v21  ;;  %v742_v34 = vsub.f32 1.5, %v741_v22  ;;  %v1027_v42 = vmul.f32 %v2472_v31, %v2438_v2  ;;  %v686_v4 = vsel %vm685_vm11, %v2390_v11, %v684_v29 }
  0xd4   : > { %1882 = vrsqrt.f32 %v2478_v36  ;;  %v2498_v47 = vmul.f32 0.0044444446, %v537_v35  ;;  %v717_v49 = vmul.f32 0.5, %v716_v37  ;;  %v2504_v50 = vsel %vm687_vm12, %v688_v40, %v686_v4  ;;  %v533_v60 = vpop.xlane.xlu0 %532 }
  0xd5   : > { %v732_v45 = vmul.f32 %v731_v33, %v2399_v24  ;;  %v743_v46 = vmul.f32 %v2422_v52, %v742_v34  ;;  %1884 = vrsqrt.f32 %v2491_v43  ;;  %v763_v53 = vmul.f32 %v2485_v41, %v2444_v13 }
  0xd6   : > { %v2509_v54 = vmul.f32 0.0044444446, %v541_v38  ;;  %v1077_v56 = vmul.f32 0.5, %v1076_v15  ;;  %1886 = vrsqrt.f32 %v2481_v39  ;;  %v1028_v52 = vmul.f32 %v2472_v31, %v1027_v42 }
  0xd7   : > { %v2493_v44 = vpop.eup %1878  ;;  %v734_v58 = vsel %vm733_vm13, %v2399_v24, %v732_v45  ;;  %v744_v59 = vmul.f32 %v743_v46, %v2404_v30  ;;  %1888 = vrsqrt.f32 %v2498_v47  ;;  %vm735_vm14 = vcmp.eq.f32.partialorder %v2399_v24, 0.0 }
  0xd8   : > { %v2500_v48 = vpop.eup %1880  ;;  %v1087_v57 = vmul.f32 %v2493_v44, %v2452_v17  ;;  %1890 = vrsqrt.f32 %v2504_v50  ;;  %v736_v61 = vand.u32 2147483648, %v2399_v24  ;;  %v718_v62 = vsub.f32 1.5, %v717_v49 }
  0xd9   : > { %v775_v11 = vmul.f32 %v2500_v48, %v2455_v19  ;;  %vm745_vm15 = vcmp.eq.f32.partialorder %v2404_v30, inf  ;;  %vm747_vm0 = vcmp.eq.f32.partialorder %v2404_v30, 0.0  ;;  %v764_v0 = vmul.f32 %v2485_v41, %v763_v53  ;;  %v549_v1 = vpop.xlane.xlu1 %548 }
  0xda   : > { %v2523_v63 = vpop.eup %1882  ;;  %1892 = vrsqrt.f32 %v2509_v54  ;;  %v1078_v6 = vsub.f32 1.5, %v1077_v56  ;;  %v2531_v7 = vsel %vm735_vm14, %v736_v61, %v734_v58  ;;  %v748_v9 = vand.u32 2147483648, %v2404_v30  ;;  %v553_v10 = vpop.xlane.xlu2 %552 }
  0xdb   : > { %v2529_v3 = vpop.eup %1884  ;;  %3757 = vst [vmem:[#allocation12_spill] sm:$0xff] %v2531_v7  ;;  %v776_v24 = vmul.f32 %v2500_v48, %v775_v11  ;;  %v1029_v12 = vmul.f32 0.5, %v1028_v52  ;;  %v1088_v5 = vmul.f32 %v2493_v44, %v1087_v57  ;;  %v746_v16 = vsel %vm745_vm15, %v2404_v30, %v744_v59 }
  0xdc   : > { %vm721_vm1 = vcmp.eq.f32.partialorder %v2420_v51, inf  ;;  %v751_v18 = vmul.f32 %v2529_v3, %v2491_v43  ;;  %v2540_v21 = vpop.eup %1886  ;;  %v1039_v22 = vmul.f32 %v2523_v63, %v2478_v36  ;;  %v719_v23 = vmul.f32 %v2446_v14, %v718_v62  ;;  %v545_v30 = vpop.xlane.xlu0 %544 }
  0xdd   : > { %v2545_v8 = vmul.f32 0.0044444446, %v533_v60  ;;  %v2547_v25 = vmul.f32 0.0044444446, %v549_v1  ;;  %v2549_v26 = vpop.eup %1888  ;;  %1894 = vrsqrt.f32 %v2531_v7  ;;  %v765_v27 = vmul.f32 0.5, %v764_v0 }
  0xde   : > { %v752_v28 = vmul.f32 %v2529_v3, %v751_v18  ;;  %v2553_v29 = vmul.f32 0.0044444446, %v553_v10  ;;  %v2555_v32 = vpop.eup %1890  ;;  %v1079_v33 = vmul.f32 %v2457_v20, %v1078_v6  ;;  %vm723_vm2 = vcmp.eq.f32.partialorder %v2420_v51, 0.0 }
  0xdf   : > { %v777_v14 = vmul.f32 0.5, %v776_v24  ;;  %v799_v34 = vmul.f32 %v2549_v26, %v2498_v47  ;;  %1896 = vrsqrt.f32 %v2545_v8  ;;  %v1030_v37 = vsub.f32 1.5, %v1029_v12 }
  0xe0   : > { %v2562_v35 = vpop.eup %1892  ;;  %v1089_v38 = vmul.f32 0.5, %v1088_v5  ;;  %v2566_v40 = vsel %vm747_vm0, %v748_v9, %v746_v16  ;;  %1898 = vrsqrt.f32 %v2547_v25  ;;  %v2571_v20 = vmul.f32 %v2540_v21, %v2481_v39 }
  0xe1   : > { %3758 = vst [vmem:[#allocation13_spill] sm:$0xff] %v2566_v40  ;;  %v1040_v15 = vmul.f32 %v2523_v63, %v1039_v22  ;;  %v720_v42 = vmul.f32 %v719_v23, %v2420_v51  ;;  %v800_v4 = vmul.f32 %v2549_v26, %v799_v34  ;;  %v766_v45 = vsub.f32 1.5, %v765_v27  ;;  %v561_v9 = vpop.xlane.xlu1 %560 }
  0xe2   : > { %v753_v46 = vmul.f32 0.5, %v752_v28  ;;  %v811_v49 = vmul.f32 %v2562_v35, %v2509_v54  ;;  %1900 = vrsqrt.f32 %v2553_v29  ;;  %v2581_v53 = vmul.f32 %v2555_v32, %v2504_v50 }
  0xe3   : > { %1902 = vrsqrt.f32 %v2566_v40  ;;  %v724_v56 = vand.u32 2147483648, %v2420_v51  ;;  %v778_v52 = vsub.f32 1.5, %v777_v14  ;;  %v2585_v11 = vpop.eup %1894  ;;  %v2588_v57 = vmul.f32 %v1079_v33, %v2427_v55 }
  0xe4   : > { %v1031_v58 = vmul.f32 %v2472_v31, %v1030_v37  ;;  %v1090_v59 = vsub.f32 1.5, %v1089_v38  ;;  %v772_v60 = vand.u32 2147483648, %v2444_v13  ;;  %v1041_v62 = vmul.f32 0.5, %v1040_v15  ;;  %v565_v37 = vpop.xlane.xlu2 %564 }
  0xe5   : > { %v2592_v61 = vpop.eup %1896  ;;  %v722_v0 = vsel %vm721_vm1, %v2420_v51, %v720_v42  ;;  %vm769_vm3 = vcmp.eq.f32.partialorder %v2444_v13, inf  ;;  %v801_v1 = vmul.f32 0.5, %v800_v4  ;;  %v2598_v6 = vmul.f32 0.0044444446, %v545_v30 }
  0xe6   : > { %v2600_v24 = vpop.eup %1898  ;;  %v767_v31 = vmul.f32 %v2485_v41, %v766_v45  ;;  %v754_v10 = vsub.f32 1.5, %v753_v46  ;;  %v812_v12 = vmul.f32 %v2562_v35, %v811_v49  ;;  %v787_v5 = vmul.f32 %v2592_v61, %v2545_v8 }
  0xe7   : > { %v779_v16 = vmul.f32 %v2500_v48, %v778_v52  ;;  %vm781_vm4 = vcmp.eq.f32.partialorder %v2455_v19, inf  ;;  %v835_v18 = vmul.f32 %v2600_v24, %v2547_v25  ;;  %1904 = vrsqrt.f32 %v2598_v6 }
  0xe8   : > { %v2611_v22 = vpop.eup %1900  ;;  %v2614_v23 = vmul.f32 %v1031_v58, %v2438_v2  ;;  %v2618_v41 = vsel %vm723_vm2, %v724_v56, %v722_v0  ;;  %vm771_vm5 = vcmp.eq.f32.partialorder %v2444_v13, 0.0  ;;  %v784_v48 = vand.u32 2147483648, %v2455_v19 }
  0xe9   : > { %3759 = vst [vmem:[#allocation14_spill] sm:$0xff] %v2618_v41  ;;  %v2622_v27 = vmul.f32 0.0044444446, %v561_v9  ;;  %v2624_v28 = vpop.eup %1902  ;;  %v1091_v33 = vmul.f32 %v2493_v44, %v1090_v59  ;;  %v1042_v14 = vsub.f32 1.5, %v1041_v62  ;;  %v2629_v34 = vmul.f32 %v2585_v11, %v2531_v7  ;;  %v557_v59 = vpop.xlane.xlu0 %556 }
  0xea   : > { %3760 = vst [vmem:[#allocation15_spill] sm:$0xff] %v2624_v28  ;;  %vm783_vm6 = vcmp.eq.f32.partialorder %v2455_v19, 0.0  ;;  %v802_v51 = vsub.f32 1.5, %v801_v1  ;;  %v768_v38 = vmul.f32 %v767_v31, %v2444_v13  ;;  %v755_v15 = vmul.f32 %v2529_v3, %v754_v10 }
  0xeb   : > { %v813_v42 = vmul.f32 0.5, %v812_v12  ;;  %v788_v4 = vmul.f32 %v2592_v61, %v787_v5  ;;  %1906 = vrsqrt.f32 %v2618_v41  ;;  %v780_v44 = vmul.f32 %v779_v16, %v2455_v19  ;;  %v573_v16 = vpop.xlane.xlu1 %572 }
  0xec   : > { %v836_v45 = vmul.f32 %v2600_v24, %v835_v18  ;;  %v847_v46 = vmul.f32 %v2611_v22, %v2553_v29  ;;  %v1123_v49 = vmul.f32 %v2624_v28, %v2566_v40  ;;  %vm757_vm7 = vcmp.eq.f32.partialorder %v2491_v43, inf }
  0xed   : > { %1908 = vrsqrt.f32 %v2622_v27  ;;  %v2644_v3 = vmul.f32 0.0044444446, %v565_v37  ;;  %v2646_v30 = vpop.eup %1904  ;;  %v2649_v56 = vmul.f32 %v1091_v33, %v2452_v17  ;;  %v1043_v52 = vmul.f32 %v2523_v63, %v1042_v14 }
  0xee   : > { %vm759_vm8 = vcmp.eq.f32.partialorder %v2491_v43, 0.0  ;;  %v803_v58 = vmul.f32 %v2549_v26, %v802_v51  ;;  %v770_v62 = vsel %vm769_vm3, %v2444_v13, %v768_v38  ;;  %v756_v0 = vmul.f32 %v755_v15, %v2491_v43 }
  0xef   : > { %v814_v1 = vsub.f32 1.5, %v813_v42  ;;  %v789_v9 = vmul.f32 0.5, %v788_v4  ;;  %v782_v31 = vsel %vm781_vm4, %v2455_v19, %v780_v44  ;;  %v837_v10 = vmul.f32 0.5, %v836_v45 }
  0xf0   : > { %v848_v63 = vmul.f32 %v2611_v22, %v847_v46  ;;  %v823_v12 = vmul.f32 %v2646_v30, %v2598_v6  ;;  %v1124_v26 = vmul.f32 %v2624_v28, %v1123_v49  ;;  %v760_v5 = vand.u32 2147483648, %v2491_v43  ;;  %v577_v49 = vpop.xlane.xlu2 %576 }
  0xf1   : > { %vm805_vm9 = vcmp.eq.f32.partialorder %v2498_v47, inf  ;;  %1910 = vrsqrt.f32 %v2644_v3  ;;  %v2668_v18 = vpop.eup %1906  ;;  %v2671_v33 = vmul.f32 %v1043_v52, %v2478_v36  ;;  %v2677_v14 = vsel %vm771_vm5, %v772_v60, %v770_v62 }
  0xf2   : > { %3761 = vst [vmem:[#allocation16_spill] sm:$0xff] %v2677_v14  ;;  %v804_v51 = vmul.f32 %v803_v58, %v2498_v47  ;;  %vm807_vm10 = vcmp.eq.f32.partialorder %v2498_v47, 0.0  ;;  %v808_v37 = vand.u32 2147483648, %v2498_v47  ;;  %v2686_v15 = vsel %vm783_vm6, %v784_v48, %v782_v31 }
  0xf3   : > { %v2682_v38 = vpop.eup %1908  ;;  %3762 = vst [vmem:[#allocation17_spill] sm:$0xff] %v2686_v15  ;;  %v758_v42 = vsel %vm757_vm7, %v2491_v43, %v756_v0  ;;  %v815_v13 = vmul.f32 %v2562_v35, %v814_v1  ;;  %v790_v60 = vsub.f32 1.5, %v789_v9  ;;  %v838_v4 = vsub.f32 1.5, %v837_v10 }
  0xf4   : > { %v849_v44 = vmul.f32 0.5, %v848_v63  ;;  %v824_v45 = vmul.f32 %v2646_v30, %v823_v12  ;;  %v871_v46 = vmul.f32 %v2682_v38, %v2622_v27  ;;  %v2695_v52 = vmul.f32 0.5, %v1124_v26  ;;  %v569_v26 = vpop.xlane.xlu0 %568 }
  0xf5   : > { %1912 = vrsqrt.f32 %v2677_v14  ;;  %vm817_vm11 = vcmp.eq.f32.partialorder %v2509_v54, inf  ;;  %v820_v19 = vand.u32 2147483648, %v2509_v54  ;;  %v2702_v35 = vmul.f32 %v2668_v18, %v2618_v41 }
  0xf6   : > { %1914 = vrsqrt.f32 %v2686_v15  ;;  %v2707_v48 = vsel %vm759_vm8, %v760_v5, %v758_v42  ;;  %v806_v58 = vsel %vm805_vm9, %v2498_v47, %v804_v51  ;;  %vm819_vm12 = vcmp.eq.f32.partialorder %v2509_v54, 0.0 }
  0xf7   : > { %3763 = vst [vmem:[#allocation18_spill] sm:$0xff] %v2707_v48  ;;  %v2713_v62 = vpop.eup %1910  ;;  %v816_v0 = vmul.f32 %v815_v13, %v2509_v54  ;;  %v791_v1 = vmul.f32 %v2592_v61, %v790_v60  ;;  %v2717_v9 = vmul.f32 0.0044444446, %v557_v59  ;;  %v2719_v31 = vmul.f32 0.0044444446, %v573_v16  ;;  %v585_v13 = vpop.xlane.xlu1 %584 }
  0xf8   : > { %v839_v43 = vmul.f32 %v2600_v24, %v838_v4  ;;  %v850_v10 = vsub.f32 1.5, %v849_v44  ;;  %v825_v63 = vmul.f32 0.5, %v824_v45  ;;  %v872_v12 = vmul.f32 %v2682_v38, %v871_v46 }
  0xf9   : > { %1916 = vrsqrt.f32 %v2707_v48  ;;  %vm793_vm13 = vcmp.eq.f32.partialorder %v2545_v8, inf  ;;  %v883_v5 = vmul.f32 %v2713_v62, %v2644_v3  ;;  %v2727_v51 = vmul.f32 0.0044444446, %v577_v49 }
  0xfa   : > { %vm795_vm14 = vcmp.eq.f32.partialorder %v2545_v8, 0.0  ;;  %v796_v61 = vand.u32 2147483648, %v2545_v8  ;;  %vm841_vm15 = vcmp.eq.f32.partialorder %v2547_v25, inf  ;;  %vm843_vm0 = vcmp.eq.f32.partialorder %v2547_v25, 0.0 }
  0xfb   : > { %1918 = vrsqrt.f32 %v2717_v9  ;;  %v2734_v24 = vpop.eup %1912  ;;  %v2738_v59 = vsel %vm807_vm10, %v808_v37, %v806_v58  ;;  %v818_v16 = vsel %vm817_vm11, %v2509_v54, %v816_v0  ;;  %v792_v42 = vmul.f32 %v791_v1, %v2545_v8  ;;  %v589_v58 = vpop.xlane.xlu2 %588 }
  0xfc   : > { %3764 = vst [vmem:[#allocation19_spill] sm:$0xff] %v2734_v24  ;;  %1920 = vrsqrt.f32 %v2719_v31  ;;  %v2745_v60 = vpop.eup %1914  ;;  %v840_v4 = vmul.f32 %v839_v43, %v2547_v25  ;;  %v851_v44 = vmul.f32 %v2611_v22, %v850_v10  ;;  %v826_v45 = vsub.f32 1.5, %v825_v63 }
  0xfd   : > { %3765 = vst [vmem:[#allocation20_spill] sm:$0xff] %v2738_v59  ;;  %v873_v46 = vmul.f32 0.5, %v872_v12  ;;  %v844_v47 = vand.u32 2147483648, %v2547_v25  ;;  %vm853_vm1 = vcmp.eq.f32.partialorder %v2553_v29, inf  ;;  %v884_v37 = vmul.f32 %v2713_v62, %v883_v5 }
  0xfe   : > { %3766 = vst [vmem:[#allocation21_spill] sm:$0xff] %v2745_v60  ;;  %1922 = vrsqrt.f32 %v2727_v51  ;;  %v2755_v49 = vmul.f32 %v2734_v24, %v2677_v14  ;;  %vm855_vm2 = vcmp.eq.f32.partialorder %v2553_v29, 0.0  ;;  %v856_v22 = vand.u32 2147483648, %v2553_v29 }
  0xff   : > { %1924 = vrsqrt.f32 %v2738_v59  ;;  %v2760_v0 = vpop.eup %1916  ;;  %v2764_v1 = vsel %vm819_vm12, %v820_v19, %v818_v16  ;;  %v794_v43 = vsel %vm793_vm13, %v2545_v8, %v792_v42  ;;  %v2769_v10 = vmul.f32 0.0044444446, %v569_v26 }
 0x100   : > { %3767 = vst [vmem:[#allocation22_spill] sm:$0xff] %v2755_v49  ;;  %v2771_v63 = vmul.f32 0.0044444446, %v585_v13  ;;  %v842_v5 = vsel %vm841_vm15, %v2547_v25, %v840_v4  ;;  %v852_v14 = vmul.f32 %v851_v44, %v2553_v29  ;;  %v827_v54 = vmul.f32 %v2646_v30, %v826_v45  ;;  %v581_v4 = vpop.xlane.xlu0 %580 }
 0x101   : > { %3768 = vst [vmem:[#allocation23_spill] sm:$0xff] %v2760_v0  ;;  %v2773_v12 = vpop.eup %1918  ;;  %v874_v19 = vsub.f32 1.5, %v873_v46  ;;  %v885_v40 = vmul.f32 0.5, %v884_v37  ;;  %1926 = vrsqrt.f32 %v2769_v10  ;;  %v2785_v42 = vmul.f32 0.0044444446, %v589_v58 }
 0x102   : > { %3769 = vst [vmem:[#allocation24_spill] sm:$0xff] %v2764_v1  ;;  %v2780_v16 = vpop.eup %1920  ;;  %v859_v26 = vmul.f32 %v2773_v12, %v2717_v9  ;;  %1928 = vrsqrt.f32 %v2764_v1  ;;  %vm829_vm3 = vcmp.eq.f32.partialorder %v2598_v6, inf  ;;  %v832_v13 = vand.u32 2147483648, %v2598_v6 }
 0x103   : > { %v907_v30 = vmul.f32 %v2780_v16, %v2719_v31  ;;  %v2796_v45 = vmul.f32 %v2745_v60, %v2686_v15  ;;  %v2800_v46 = vsel %vm795_vm14, %v796_v61, %v794_v43  ;;  %v2804_v37 = vsel %vm843_vm0, %v844_v47, %v842_v5  ;;  %v597_v5 = vpop.xlane.xlu1 %596 }
 0x104   : > { %v2792_v44 = vpop.eup %1922  ;;  %3771 = vst [vmem:[#allocation26_spill] sm:$0xff] %v2800_v46  ;;  %vm831_vm4 = vcmp.eq.f32.partialorder %v2598_v6, 0.0  ;;  %1930 = vrsqrt.f32 %v2771_v63  ;;  %v854_v1 = vsel %vm853_vm1, %v2553_v29, %v852_v14  ;;  %v828_v15 = vmul.f32 %v827_v54, %v2598_v6 }
 0x105   : > { %3770 = vst [vmem:[#allocation25_spill] sm:$0xff] %v2796_v45  ;;  %v2808_v58 = vpop.eup %1924  ;;  %v875_v8 = vmul.f32 %v2682_v38, %v874_v19  ;;  %v919_v61 = vmul.f32 %v2792_v44, %v2727_v51  ;;  %v886_v25 = vsub.f32 1.5, %v885_v40  ;;  %v860_v47 = vmul.f32 %v2773_v12, %v859_v26 }
 0x106   : > { %3772 = vst [vmem:[#allocation27_spill] sm:$0xff] %v2804_v37  ;;  %v908_v43 = vmul.f32 %v2780_v16, %v907_v30  ;;  %1932 = vrsqrt.f32 %v2785_v42  ;;  %v1135_v7 = vmul.f32 %v2760_v0, %v2707_v48  ;;  %vm877_vm5 = vcmp.eq.f32.partialorder %v2622_v27, inf }
 0x107   : > { %3773 = vst [vmem:[#allocation28_spill] sm:$0xff] %v2808_v58  ;;  %1934 = vrsqrt.f32 %v2800_v46  ;;  %v880_v14 = vand.u32 2147483648, %v2622_v27  ;;  %v2825_v38 = vpop.eup %1926  ;;  %v2830_v40 = vsel %vm855_vm2, %v856_v22, %v854_v1  ;;  %vm879_vm6 = vcmp.eq.f32.partialorder %v2622_v27, 0.0 }
 0x108   : > { %1936 = vrsqrt.f32 %v2804_v37  ;;  %3774 = vst [vmem:[#allocation29_spill] sm:$0xff] %v2830_v40  ;;  %v920_v54 = vmul.f32 %v2792_v44, %v919_v61  ;;  %v2834_v19 = vmul.f32 0.0044444446, %v581_v4  ;;  %v2836_v26 = vpop.eup %1928  ;;  %v830_v30 = vsel %vm829_vm3, %v2598_v6, %v828_v15 }
 0x109   : > { %3775 = vst [vmem:[#allocation30_spill] sm:$0xff] %v2836_v26  ;;  %v876_v48 = vmul.f32 %v875_v8, %v2622_v27  ;;  %v895_v28 = vmul.f32 %v2825_v38, %v2769_v10  ;;  %v2844_v29 = vmul.f32 0.0044444446, %v597_v5  ;;  %v887_v1 = vmul.f32 %v2713_v62, %v886_v25 }
 0x10a   : > { %v2846_v22 = vpop.eup %1930  ;;  %v861_v61 = vmul.f32 0.5, %v860_v47  ;;  %v909_v4 = vmul.f32 0.5, %v908_v43  ;;  %1938 = vrsqrt.f32 %v2834_v19  ;;  %v1136_v26 = vmul.f32 %v2760_v0, %v1135_v7 }
 0x10b   : > { %1940 = vrsqrt.f32 %v2830_v40  ;;  %v896_v15 = vmul.f32 %v2825_v38, %v895_v28  ;;  %v943_v8 = vmul.f32 %v2846_v22, %v2771_v63  ;;  %vm889_vm7 = vcmp.eq.f32.partialorder %v2644_v3, inf }
 0x10c   : > { %v2855_v41 = vpop.eup %1932  ;;  %v892_v5 = vand.u32 2147483648, %v2644_v3  ;;  %v921_v62 = vmul.f32 0.5, %v920_v54  ;;  %1942 = vrsqrt.f32 %v2844_v29  ;;  %v2864_v7 = vmul.f32 %v2808_v58, %v2738_v59  ;;  %v593_v54 = vpop.xlane.xlu0 %592 }
 0x10d   : > { %v2860_v25 = vpop.eup %1934  ;;  %v2868_v28 = vsel %vm831_vm4, %v832_v13, %v830_v30  ;;  %v878_v47 = vsel %vm877_vm5, %v2622_v27, %v876_v48  ;;  %vm891_vm8 = vcmp.eq.f32.partialorder %v2644_v3, 0.0  ;;  %v944_v43 = vmul.f32 %v2846_v22, %v943_v8 }
 0x10e   : > { %3776 = vst [vmem:[#allocation31_spill] sm:$0xff] %v2864_v7  ;;  %v2875_v0 = vpop.eup %1936  ;;  %v888_v60 = vmul.f32 %v887_v1, %v2644_v3  ;;  %v862_v45 = vsub.f32 1.5, %v861_v61  ;;  %v910_v59 = vsub.f32 1.5, %v909_v4  ;;  %v955_v6 = vmul.f32 %v2855_v41, %v2785_v42  ;;  %v601_v7 = vpop.xlane.xlu2 %600 }
 0x10f   : > { %3777 = vst [vmem:[#allocation32_spill] sm:$0xff] %v2875_v0  ;;  %v2880_v13 = vmul.f32 0.5, %v1136_v26  ;;  %v897_v58 = vmul.f32 0.5, %v896_v15  ;;  %v2888_v8 = vmul.f32 %v2860_v25, %v2800_v46  ;;  %v922_v1 = vsub.f32 1.5, %v921_v62 }
 0x110   : > { %v2884_v24 = vpop.eup %1938  ;;  %v945_v61 = vmul.f32 0.5, %v944_v43  ;;  %v956_v4 = vmul.f32 %v2855_v41, %v955_v6  ;;  %v2895_v26 = vmul.f32 %v2875_v0, %v2804_v37  ;;  %1944 = vrsqrt.f32 %v2868_v28 }
 0x111   : > { %v2891_v49 = vpop.eup %1940  ;;  %v2900_v15 = vsel %vm879_vm6, %v880_v14, %v878_v47  ;;  %vm865_vm9 = vcmp.eq.f32.partialorder %v2717_v9, inf  ;;  %v931_v62 = vmul.f32 %v2884_v24, %v2834_v19  ;;  %v890_v6 = vsel %vm889_vm7, %v2644_v3, %v888_v60 }
 0x112   : > { %3778 = vst [vmem:[#allocation33_spill] sm:$0xff] %v2891_v49  ;;  %v2905_v43 = vpop.eup %1942  ;;  %v863_v48 = vmul.f32 %v2773_v12, %v862_v45  ;;  %v911_v30 = vmul.f32 %v2780_v16, %v910_v59  ;;  %vm913_vm10 = vcmp.eq.f32.partialorder %v2719_v31, inf  ;;  %v2913_v27 = vmul.f32 0.0044444446, %v601_v7  ;;  %v609_v7 = vpop.xlane.xlu1 %608 }
 0x113   : > { %3779 = vst [vmem:[#allocation34_spill] sm:$0xff] %v2900_v15  ;;  %v898_v14 = vsub.f32 1.5, %v897_v58  ;;  %v946_v47 = vsub.f32 1.5, %v945_v61  ;;  %v932_v37 = vmul.f32 %v2884_v24, %v931_v62  ;;  %v979_v46 = vmul.f32 %v2905_v43, %v2844_v29 }
 0x114   : > { %v923_v0 = vmul.f32 %v2792_v44, %v922_v1  ;;  %vm925_vm11 = vcmp.eq.f32.partialorder %v2727_v51, inf  ;;  %v957_v60 = vmul.f32 0.5, %v956_v4  ;;  %1946 = vrsqrt.f32 %v2913_v27  ;;  %v605_v3 = vpop.xlane.xlu0 %604 }
 0x115   : > { %v2923_v59 = vmul.f32 %v2891_v49, %v2830_v40  ;;  %vm867_vm12 = vcmp.eq.f32.partialorder %v2717_v9, 0.0  ;;  %vm915_vm13 = vcmp.eq.f32.partialorder %v2719_v31, 0.0  ;;  %v928_v12 = vand.u32 2147483648, %v2727_v51  ;;  %v1757_v49 = vld [vmem:[#allocation5 + $0x8] sm:$0xf0] }
 0x116   : > { %v933_v16 = vmul.f32 0.5, %v932_v37  ;;  %v980_v45 = vmul.f32 %v2905_v43, %v979_v46  ;;  %1948 = vrsqrt.f32 %v2900_v15  ;;  %v2932_v44 = vsel %vm891_vm8, %v892_v5, %v890_v6  ;;  %v2937_v1 = vpop.eup %1944 }
 0x117   : > { %3780 = vst [vmem:[#allocation35_spill] sm:$0xff] %v2923_v59  ;;  %v864_v58 = vmul.f32 %v863_v48, %v2717_v9  ;;  %vm927_vm14 = vcmp.eq.f32.partialorder %v2727_v51, 0.0  ;;  %vm901_vm15 = vcmp.eq.f32.partialorder %v2769_v10, inf  ;;  %v912_v61 = vmul.f32 %v911_v30, %v2719_v31  ;;  %v1781_v48 = vld [vmem:[#allocation5 + $0x14] sm:$0xf0] }
 0x118   : > { %3781 = vst [vmem:[#allocation36_spill] sm:$0xff] %v2932_v44  ;;  %v899_v37 = vmul.f32 %v2825_v38, %v898_v14  ;;  %v947_v46 = vmul.f32 %v2846_v22, %v946_v47  ;;  %v2942_v4 = vmul.f32 0.0044444446, %v593_v54  ;;  %v924_v5 = vmul.f32 %v923_v0, %v2727_v51 }
 0x119   : > { %v958_v62 = vsub.f32 1.5, %v957_v60  ;;  %v981_v6 = vmul.f32 0.5, %v980_v45  ;;  %vm949_vm0 = vcmp.eq.f32.partialorder %v2771_v63, inf  ;;  %v934_v40 = vsub.f32 1.5, %v933_v16 }
 0x11a   : > { %1950 = vrsqrt.f32 %v2942_v4  ;;  %v2948_v15 = vmul.f32 0.0044444446, %v609_v7  ;;  %v2950_v30 = vpop.eup %1946  ;;  %v866_v38 = vsel %vm865_vm9, %v2717_v9, %v864_v58  ;;  %vm903_vm1 = vcmp.eq.f32.partialorder %v2769_v10, 0.0 }
 0x11b   : > { %1952 = vrsqrt.f32 %v2932_v44  ;;  %vm951_vm2 = vcmp.eq.f32.partialorder %v2771_v63, 0.0  ;;  %v952_v0 = vand.u32 2147483648, %v2771_v63  ;;  %v2959_v22 = vmul.f32 0.0044444446, %v605_v3  ;;  %v1763_v3 = vld [vmem:[#allocation5 + $0x10] sm:$0xf] }
 0x11c   : > { %v914_v54 = vsel %vm913_vm10, %v2719_v31, %v912_v61  ;;  %v900_v14 = vmul.f32 %v899_v37, %v2769_v10  ;;  %v948_v47 = vmul.f32 %v947_v46, %v2771_v63  ;;  %vm961_vm3 = vcmp.eq.f32.partialorder %v2785_v42, inf  ;;  %v2969_v16 = vpop.eup %1948 }
 0x11d   : > { %v991_v60 = vmul.f32 %v2950_v30, %v2913_v27  ;;  %3782 = vst [vmem:[#allocation37_spill] sm:$0xff] %v2969_v16  ;;  %v926_v45 = vsel %vm925_vm11, %v2727_v51, %v924_v5  ;;  %v959_v58 = vmul.f32 %v2855_v41, %v958_v62  ;;  %v982_v61 = vsub.f32 1.5, %v981_v6  ;;  %v1765_v6 = vld [vmem:[#allocation5 + $0x18] sm:$0xf0]  ;;  %v1778_v16 = vld [vmem:[#allocation5 + $0x4] sm:$0xf] }
 0x11e   : > { %v935_v37 = vmul.f32 %v2884_v24, %v934_v40  ;;  %vm937_vm4 = vcmp.eq.f32.partialorder %v2834_v19, inf  ;;  %1954 = vrsqrt.f32 %v2948_v15  ;;  %v3783_v44 = vand.u32 2147483648, %v2717_v9  ;;  %v1780_v40 = vld [vmem:[#allocation5 + $0x14] sm:$0xf] }
 0x11f   : > { %v992_v46 = vmul.f32 %v2950_v30, %v991_v60  ;;  %v3784_v41 = vand.u32 2147483648, %v2719_v31  ;;  %vm963_vm5 = vcmp.eq.f32.partialorder %v2785_v42, 0.0  ;;  %v940_v24 = vand.u32 2147483648, %v2834_v19 }
 0x120   : > { %v2984_v5 = vsel %vm867_vm12, %v3783_v44, %v866_v38  ;;  %1956 = vrsqrt.f32 %v2959_v22  ;;  %v2995_v60 = vpop.eup %1950  ;;  %v2999_v9 = vsel %vm927_vm14, %v928_v12, %v926_v45  ;;  %v902_v31 = vsel %vm901_vm15, %v2769_v10, %v900_v14 }
 0x121   : > { %v2990_v62 = vsel %vm915_vm13, %v3784_v41, %v914_v54  ;;  %v950_v44 = vsel %vm949_vm0, %v2771_v63, %v948_v47  ;;  %vm939_vm6 = vcmp.eq.f32.partialorder %v2834_v19, 0.0  ;;  %vm985_vm7 = vcmp.eq.f32.partialorder %v2844_v29, inf  ;;  %v1755_v54 = vld [vmem:[#allocation5] sm:$0xf]  ;;  %v1779_v41 = vld [vmem:[#allocation5 + $0x4] sm:$0xf0]  ;;  %v3009_v7 = vpop.eup %1952 }
 0x122   : > { %v993_v38 = vmul.f32 0.5, %v992_v46  ;;  %3785 = vst [vmem:[#allocation38_spill] sm:$0xff] %v3009_v7  ;;  %v960_v51 = vmul.f32 %v959_v58, %v2785_v42  ;;  %v983_v12 = vmul.f32 %v2905_v43, %v982_v61  ;;  %v967_v14 = vmul.f32 %v2995_v60, %v2942_v4 }
 0x123   : > { %v1764_v45 = vor.u32 %v1781_v48, %v1763_v3  ;;  %1958 = vrsqrt.f32 %v2984_v5  ;;  %v936_v47 = vmul.f32 %v935_v37, %v2834_v19  ;;  %v1768_v46 = vor.u32 %v1780_v40, %v1765_v6 }
 0x124   : > { %v994_v59 = vsub.f32 1.5, %v993_v38  ;;  %1960 = vrsqrt.f32 %v2990_v62  ;;  %v988_v7 = vand.u32 2147483648, %v2844_v29  ;;  %v968_v58 = vmul.f32 %v2995_v60, %v967_v14  ;;  %v1955_v61 = vpop.eup %1954 }
 0x125   : > { %1593 = vmatpush.bf16.msra.mxu0 %v1764_v45  ;;  %v1756_v43 = vor.u32 %v1779_v41, %v1755_v54  ;;  %1962 = vrsqrt.f32 %v2999_v9  ;;  %v3786_v48 = vand.u32 2147483648, %v2769_v10  ;;  %v3029_v37 = vsel %vm951_vm2, %v952_v0, %v950_v44  ;;  %1606 = vmatpush.bf16.msra.mxu1 %v1768_v46 }
 0x126   : > { %vm987_vm8 = vcmp.eq.f32.partialorder %v2844_v29, 0.0  ;;  %v1760_v40 = vor.u32 %v1778_v16, %v1757_v49  ;;  %v1957_v6 = vpop.eup %1956  ;;  %v962_v38 = vsel %vm961_vm3, %v2785_v42, %v960_v51  ;;  %v984_v54 = vmul.f32 %v983_v12, %v2844_v29 }
 0x127   : > { %v3025_v3 = vsel %vm903_vm1, %v3786_v48, %v902_v31  ;;  %v969_v41 = vmul.f32 0.5, %v968_v58  ;;  %v1015_v10 = vmul.f32 %v1955_v61, %v2948_v15  ;;  %vm1033_vm9 = vcmp.eq.f32.partialorder %v2438_v2, inf }
 0x128   : > { %v938_v63 = vsel %vm937_vm4, %v2834_v19, %v936_v47  ;;  %v995_v0 = vmul.f32 %v2950_v30, %v994_v59  ;;  %v1003_v49 = vmul.f32 %v1957_v6, %v2959_v22  ;;  %v1052_v16 = vmul.f32 %v2540_v21, %v2571_v20 }
 0x129   : > { %vm997_vm10 = vcmp.eq.f32.partialorder %v2913_v27, inf  ;;  %v1000_v31 = vand.u32 2147483648, %v2913_v27  ;;  %v970_v44 = vsub.f32 1.5, %v969_v41  ;;  %v1016_v51 = vmul.f32 %v1955_v61, %v1015_v10  ;;  %1594 = vmatpush.bf16.msra.mxu0 %v1756_v43  ;;  %v3047_v12 = vpop.eup %1958  ;;  %1607 = vmatpush.bf16.msra.mxu1 %v1760_v40 }
 0x12a   : > { %1964 = vrsqrt.f32 %v3025_v3  ;;  %v3787_v14 = vand.u32 2147483648, %v2785_v42  ;;  %vm999_vm11 = vcmp.eq.f32.partialorder %v2913_v27, 0.0  ;;  %v1004_v20 = vmul.f32 %v1957_v6, %v1003_v49  ;;  %v3057_v45 = vpop.eup %1960 }
 0x12b   : > { %v1053_v30 = vmul.f32 0.5, %v1052_v16  ;;  %1966 = vrsqrt.f32 %v3029_v37  ;;  %v3062_v47 = vsel %vm939_vm6, %v940_v24, %v938_v63  ;;  %v986_v46 = vsel %vm985_vm7, %v2844_v29, %v984_v54  ;;  %v3067_v58 = vpop.eup %1962 }
 0x12c   : > { %v3054_v59 = vsel %vm963_vm5, %v3787_v14, %v962_v38  ;;  %v1017_v42 = vmul.f32 0.5, %v1016_v51  ;;  %v996_v43 = vmul.f32 %v995_v0, %v2913_v27  ;;  %v1005_v48 = vmul.f32 0.5, %v1004_v20 }
 0x12d   : > { %v1054_v40 = vsub.f32 1.5, %v1053_v30  ;;  %v1064_v38 = vmul.f32 %v2555_v32, %v2581_v53  ;;  %1968 = vrsqrt.f32 %v3054_v59  ;;  %v971_v19 = vmul.f32 %v2995_v60, %v970_v44 }
 0x12e   : > { %vm973_vm12 = vcmp.eq.f32.partialorder %v2942_v4, inf  ;;  %v1018_v24 = vsub.f32 1.5, %v1017_v42  ;;  %v976_v41 = vand.u32 2147483648, %v2942_v4  ;;  %vm1021_vm13 = vcmp.eq.f32.partialorder %v2948_v15, inf }
 0x12f   : > { %v1006_v54 = vsub.f32 1.5, %v1005_v48  ;;  %v1065_v10 = vmul.f32 0.5, %v1064_v38  ;;  %1970 = vrsqrt.f32 %v3062_v47  ;;  %v3080_v63 = vsel %vm987_vm8, %v988_v7, %v986_v46 }
 0x130   : > { %vm975_vm14 = vcmp.eq.f32.partialorder %v2942_v4, 0.0  ;;  %v1019_v53 = vmul.f32 %v1955_v61, %v1018_v24  ;;  %v1024_v60 = vand.u32 2147483648, %v2948_v15  ;;  %v3084_v0 = vpop.eup %1964  ;;  %v998_v49 = vsel %vm997_vm10, %v2913_v27, %v996_v43 }
 0x131   : > { %vm1009_vm15 = vcmp.eq.f32.partialorder %v2959_v22, inf  ;;  %v1034_v29 = vsel %vm1033_vm9, %v2438_v2, %v2614_v23  ;;  %vm1045_vm0 = vcmp.eq.f32.partialorder %v2478_v36, inf  ;;  %v1055_v7 = vmul.f32 %v2540_v21, %v1054_v40  ;;  %v3096_v61 = vpop.eup %1966 }
 0x132   : > { %v972_v16 = vmul.f32 %v971_v19, %v2942_v4  ;;  %vm1023_vm1 = vcmp.eq.f32.partialorder %v2948_v15, 0.0  ;;  %v1007_v44 = vmul.f32 %v1957_v6, %v1006_v54  ;;  %v1046_v51 = vsel %vm1045_vm0, %v2478_v36, %v2671_v33 }
 0x133   : > { %v1066_v14 = vsub.f32 1.5, %v1065_v10  ;;  %1972 = vrsqrt.f32 %v3080_v63  ;;  %v1012_v20 = vand.u32 2147483648, %v2959_v22  ;;  %v1036_v23 = vand.u32 2147483648, %v2438_v2  ;;  %v3106_v21 = vpop.eup %1968 }
 0x134   : > { %v1048_v30 = vand.u32 2147483648, %v2478_v36  ;;  %v3110_v46 = vsel %vm999_vm11, %v1000_v31, %v998_v49  ;;  %v1020_v6 = vmul.f32 %v1019_v53, %v2948_v15  ;;  %vm1011_vm2 = vcmp.eq.f32.partialorder %v2959_v22, 0.0 }
 0x135   : > { %vm1035_vm3 = vcmp.eq.f32.partialorder %v2438_v2, 0.0  ;;  %vm1047_vm4 = vcmp.eq.f32.partialorder %v2478_v36, 0.0  ;;  %v1056_v43 = vmul.f32 %v1055_v7, %v2481_v39  ;;  %vm1057_vm5 = vcmp.eq.f32.partialorder %v2481_v39, inf  ;;  %v3122_v48 = vpop.eup %1970 }
 0x136   : > { %v3116_v33 = vsel %vm1035_vm3, %v1036_v23, %v1034_v29  ;;  %v3118_v42 = vsel %vm1047_vm4, %v1048_v30, %v1046_v51  ;;  %v974_v27 = vsel %vm973_vm12, %v2942_v4, %v972_v16  ;;  %v1008_v31 = vmul.f32 %v1007_v44, %v2959_v22  ;;  %v3789_v51 = vld [vmem:[#allocation22_spill] sm:$0xff] }
 0x137   : > { %v1067_v2 = vmul.f32 %v2555_v32, %v1066_v14  ;;  %v1100_v36 = vmul.f32 %v2668_v18, %v2702_v35  ;;  %1974 = vrsqrt.f32 %v3110_v46  ;;  %vm1059_vm6 = vcmp.eq.f32.partialorder %v2481_v39, 0.0  ;;  %v3790_v14 = vld [vmem:[#allocation19_spill] sm:$0xff] }
 0x138   : > { %v1060_v40 = vand.u32 2147483648, %v2481_v39  ;;  %vm1069_vm7 = vcmp.eq.f32.partialorder %v2504_v50, inf  ;;  %v1022_v38 = vsel %vm1021_vm13, %v2948_v15, %v1020_v6  ;;  %vm1071_vm8 = vcmp.eq.f32.partialorder %v2504_v50, 0.0 }
 0x139   : > { %v1072_v19 = vand.u32 2147483648, %v2504_v50  ;;  %v1101_v32 = vmul.f32 0.5, %v1100_v36  ;;  %v3140_v24 = vpop.eup %1972  ;;  %v3144_v35 = vsel %vm975_vm14, %v976_v41, %v974_v27  ;;  %v1058_v54 = vsel %vm1057_vm5, %v2481_v39, %v1056_v43  ;;  %v3791_v43 = vld [vmem:[#allocation25_spill] sm:$0xff] }
 0x13a   : > { %vm1081_vm9 = vcmp.eq.f32.partialorder %v2427_v55, inf  ;;  %v1112_v10 = vmul.f32 %v2585_v11, %v2629_v34  ;;  %v1010_v53 = vsel %vm1009_vm15, %v2959_v22, %v1008_v31  ;;  %v1068_v49 = vmul.f32 %v1067_v2, %v2504_v50  ;;  %v3792_v27 = vld [vmem:[#allocation21_spill] sm:$0xff]  ;;  %v3793_v31 = vld [vmem:[#allocation14_spill] sm:$0xff]  ;;  %v3794_v2 = vld [vmem:[#allocation15_spill] sm:$0xff] }
 0x13b   : > { %v1082_v4 = vsel %vm1081_vm9, %v2427_v55, %v2588_v57  ;;  %vm1083_vm10 = vcmp.eq.f32.partialorder %v2427_v55, 0.0  ;;  %v3161_v41 = vsel %vm1023_vm1, %v1024_v60, %v1022_v38  ;;  %v1084_v29 = vand.u32 2147483648, %v2427_v55 }
 0x13c   : > { %v1102_v7 = vsub.f32 1.5, %v1101_v32  ;;  %v1113_v16 = vmul.f32 0.5, %v1112_v10  ;;  %1976 = vrsqrt.f32 %v3144_v35  ;;  %v3167_v34 = vsel %vm1059_vm6, %v1060_v40, %v1058_v54  ;;  %v3797_v32 = vld [vmem:[#allocation12_spill] sm:$0xff]  ;;  %v3798_v54 = vld [vmem:[#allocation23_spill] sm:$0xff] }
 0x13d   : > { %3788 = vst [vmem:[#allocation39_spill] sm:$0xff] %v3167_v34  ;;  %vm1093_vm11 = vcmp.eq.f32.partialorder %v2452_v17, inf  ;;  %v1126_v57 = vsub.f32 1.5, %v2695_v52  ;;  %v3171_v44 = vpop.eup %1974  ;;  %v3175_v15 = vsel %vm1011_vm2, %v1012_v20, %v1010_v53  ;;  %v3177_v60 = vsel %vm1083_vm10, %v1084_v29, %v1082_v4 }
 0x13e   : > { %v1094_v55 = vsel %vm1093_vm11, %v2452_v17, %v2649_v56  ;;  %v1148_v39 = vmul.f32 %v3790_v14, %v3789_v51  ;;  %1978 = vrsqrt.f32 %v3161_v41  ;;  %v1070_v52 = vsel %vm1069_vm7, %v2504_v50, %v1068_v49  ;;  %v3800_v51 = vld [vmem:[#allocation18_spill] sm:$0xff] }
 0x13f   : > { %v1096_v23 = vand.u32 2147483648, %v2452_v17  ;;  %v1138_v22 = vsub.f32 1.5, %v2880_v13  ;;  %v1103_v20 = vmul.f32 %v2668_v18, %v1102_v7  ;;  %v1114_v30 = vsub.f32 1.5, %v1113_v16  ;;  %v3799_v7 = vld [vmem:[#allocation13_spill] sm:$0xff] }
 0x140   : > { %v1149_v6 = vmul.f32 0.5, %v1148_v39  ;;  %v1160_v56 = vmul.f32 %v3792_v27, %v3791_v43  ;;  %1980 = vrsqrt.f32 %v3175_v15  ;;  %vm1095_vm12 = vcmp.eq.f32.partialorder %v2452_v17, 0.0  ;;  %v3801_v39 = vld [vmem:[#allocation31_spill] sm:$0xff] }
 0x141   : > { %vm1105_vm13 = vcmp.eq.f32.partialorder %v3793_v31, inf  ;;  %v1127_v36 = vmul.f32 %v3794_v2, %v1126_v57  ;;  %v3198_v40 = vsel %vm1071_vm8, %v1072_v19, %v1070_v52  ;;  %v3200_v13 = vsel %vm1095_vm12, %v1096_v23, %v1094_v55  ;;  %v3802_v52 = vld [vmem:[#allocation28_spill] sm:$0xff] }
 0x142   : > { %3795 = vst [vmem:[#allocation22_spill] sm:$0xff] %v3198_v40  ;;  %vm1107_vm14 = vcmp.eq.f32.partialorder %v3793_v31, 0.0  ;;  %v1108_v18 = vand.u32 2147483648, %v3793_v31  ;;  %v3204_v38 = vpop.eup %1976  ;;  %vm1117_vm15 = vcmp.eq.f32.partialorder %v3797_v32, inf  ;;  %v1120_v17 = vand.u32 2147483648, %v3797_v32  ;;  %v3805_v40 = vld [vmem:[#allocation16_spill] sm:$0xff] }
 0x143   : > { %3796 = vst [vmem:[#allocation19_spill] sm:$0xff] %v3200_v13  ;;  %v1139_v10 = vmul.f32 %v3798_v54, %v1138_v22  ;;  %v1161_v53 = vmul.f32 0.5, %v1160_v56  ;;  %v1104_v49 = vmul.f32 %v1103_v20, %v3793_v31  ;;  %v1115_v50 = vmul.f32 %v2585_v11, %v1114_v30  ;;  %v3803_v30 = vld [vmem:[#allocation24_spill] sm:$0xff] }
 0x144   : > { %v1150_v19 = vsub.f32 1.5, %v1149_v6  ;;  %v1172_v4 = vmul.f32 %v2860_v25, %v2888_v8  ;;  %v3213_v29 = vpop.eup %1978  ;;  %v1128_v16 = vmul.f32 %v1127_v36, %v3799_v7  ;;  %vm1129_vm0 = vcmp.eq.f32.partialorder %v3799_v7, inf  ;;  %v3804_v6 = vld [vmem:[#allocation30_spill] sm:$0xff] }
 0x145   : > { %vm1131_vm1 = vcmp.eq.f32.partialorder %v3799_v7, 0.0  ;;  %v1162_v57 = vsub.f32 1.5, %v1161_v53  ;;  %vm1119_vm2 = vcmp.eq.f32.partialorder %v3797_v32, 0.0  ;;  %v1132_v55 = vand.u32 2147483648, %v3799_v7 }
 0x146   : > { %vm1141_vm3 = vcmp.eq.f32.partialorder %v3800_v51, inf  ;;  %v1173_v11 = vmul.f32 0.5, %v1172_v4  ;;  %v1184_v23 = vmul.f32 %v3802_v52, %v3801_v39  ;;  %v3223_v8 = vpop.eup %1980  ;;  %v1140_v22 = vmul.f32 %v1139_v10, %v3800_v51 }
 0x147   : > { %vm1143_vm4 = vcmp.eq.f32.partialorder %v3800_v51, 0.0  ;;  %v1144_v20 = vand.u32 2147483648, %v3800_v51  ;;  %v1195_v43 = vmul.f32 %v3804_v6, %v3803_v30  ;;  %v1106_v56 = vsel %vm1105_vm13, %v3793_v31, %v1104_v49 }
 0x148   : > { %v1116_v2 = vmul.f32 %v1115_v50, %v3797_v32  ;;  %v1151_v36 = vmul.f32 %v3790_v14, %v1150_v19  ;;  %v1185_v54 = vmul.f32 0.5, %v1184_v23  ;;  %v1130_v10 = vsel %vm1129_vm0, %v3799_v7, %v1128_v16 }
 0x149   : > { %v1163_v53 = vmul.f32 %v3792_v27, %v1162_v57  ;;  %v1174_v4 = vsub.f32 1.5, %v1173_v11  ;;  %v1196_v39 = vmul.f32 %v3804_v6, %v1195_v43  ;;  %vm1153_vm5 = vcmp.eq.f32.partialorder %v3805_v40, inf  ;;  %v3806_v27 = vld [vmem:[#allocation17_spill] sm:$0xff]  ;;  %v3807_v43 = vld [vmem:[#allocation32_spill] sm:$0xff] }
 0x14a   : > { %v1156_v34 = vand.u32 2147483648, %v3805_v40  ;;  %v1186_v13 = vsub.f32 1.5, %v1185_v54  ;;  %v1207_v49 = vmul.f32 %v2937_v1, %v2868_v28  ;;  %v3246_v14 = vsel %vm1107_vm14, %v1108_v18, %v1106_v56 }
 0x14b   : > { %v1142_v50 = vsel %vm1141_vm3, %v3800_v51, %v1140_v22  ;;  %vm1155_vm6 = vcmp.eq.f32.partialorder %v3805_v40, 0.0  ;;  %vm1165_vm7 = vcmp.eq.f32.partialorder %v3806_v27, inf  ;;  %v1197_v19 = vmul.f32 0.5, %v1196_v39 }
 0x14c   : > { %v1118_v16 = vsel %vm1117_vm15, %v3797_v32, %v1116_v2  ;;  %v3258_v57 = vsel %vm1131_vm1, %v1132_v55, %v1130_v10  ;;  %v1152_v31 = vmul.f32 %v1151_v36, %v3805_v40  ;;  %vm1167_vm8 = vcmp.eq.f32.partialorder %v3806_v27, 0.0  ;;  %v3808_v10 = vld [vmem:[#allocation26_spill] sm:$0xff] }
 0x14d   : > { %v1208_v18 = vmul.f32 %v2937_v1, %v1207_v49  ;;  %v1164_v11 = vmul.f32 %v1163_v53, %v3806_v27  ;;  %v1175_v23 = vmul.f32 %v2860_v25, %v1174_v4  ;;  %v1187_v22 = vmul.f32 %v3802_v52, %v1186_v13  ;;  %v3810_v52 = vld [vmem:[#allocation35_spill] sm:$0xff] }
 0x14e   : > { %v1220_v56 = vmul.f32 %v3807_v43, %v2895_v26  ;;  %v3270_v7 = vsel %vm1143_vm4, %v1144_v20, %v1142_v50  ;;  %v1168_v55 = vand.u32 2147483648, %v3806_v27  ;;  %v1198_v2 = vsub.f32 1.5, %v1197_v19  ;;  %v3809_v26 = vld [vmem:[#allocation20_spill] sm:$0xff]  ;;  %v3811_v20 = vld [vmem:[#allocation33_spill] sm:$0xff] }
 0x14f   : > { %v1209_v36 = vmul.f32 0.5, %v1208_v18  ;;  %v3275_v54 = vsel %vm1119_vm2, %v1120_v17, %v1118_v16  ;;  %vm1177_vm9 = vcmp.eq.f32.partialorder %v3808_v10, inf  ;;  %vm1179_vm10 = vcmp.eq.f32.partialorder %v3808_v10, 0.0 }
 0x150   : > { %v1221_v25 = vmul.f32 0.5, %v1220_v56  ;;  %v1180_v13 = vand.u32 2147483648, %v3808_v10  ;;  %vm1189_vm11 = vcmp.eq.f32.partialorder %v3809_v26, inf  ;;  %v1232_v53 = vmul.f32 %v3811_v20, %v3810_v52 }
 0x151   : > { %v1210_v51 = vsub.f32 1.5, %v1209_v36  ;;  %v1154_v4 = vsel %vm1153_vm5, %v3805_v40, %v1152_v31  ;;  %v1166_v32 = vsel %vm1165_vm7, %v3806_v27, %v1164_v11  ;;  %v1176_v17 = vmul.f32 %v1175_v23, %v3808_v10 }
 0x152   : > { %v1188_v39 = vmul.f32 %v1187_v22, %v3809_v26  ;;  %v1199_v49 = vmul.f32 %v3804_v6, %v1198_v2  ;;  %v1222_v50 = vsub.f32 1.5, %v1221_v25  ;;  %v1233_v19 = vmul.f32 0.5, %v1232_v53  ;;  %v3814_v53 = vld [vmem:[#allocation27_spill] sm:$0xff] }
 0x153   : > { %v1243_v16 = vmul.f32 %v3047_v12, %v2984_v5  ;;  %vm1191_vm12 = vcmp.eq.f32.partialorder %v3809_v26, 0.0  ;;  %v1192_v18 = vand.u32 2147483648, %v3809_v26  ;;  %vm1201_vm13 = vcmp.eq.f32.partialorder %v3803_v30, inf }
 0x154   : > { %v1211_v31 = vmul.f32 %v2937_v1, %v1210_v51  ;;  %v3300_v11 = vsel %vm1155_vm6, %v1156_v34, %v1154_v4  ;;  %vm1203_vm14 = vcmp.eq.f32.partialorder %v3803_v30, 0.0  ;;  %v1204_v6 = vand.u32 2147483648, %v3803_v30  ;;  %v3812_v1 = vld [vmem:[#allocation34_spill] sm:$0xff]  ;;  %v3813_v34 = vld [vmem:[#allocation37_spill] sm:$0xff] }
 0x155   : > { %v1234_v23 = vsub.f32 1.5, %v1233_v19  ;;  %v1244_v22 = vmul.f32 %v3047_v12, %v1243_v16  ;;  %v3307_v56 = vsel %vm1167_vm8, %v1168_v55, %v1166_v32  ;;  %v1178_v2 = vsel %vm1177_vm9, %v3808_v10, %v1176_v17 }
 0x156   : > { %vm1213_vm15 = vcmp.eq.f32.partialorder %v2868_v28, inf  ;;  %v1255_v40 = vmul.f32 %v3813_v34, %v3812_v1  ;;  %v1190_v36 = vsel %vm1189_vm11, %v3809_v26, %v1188_v39  ;;  %v1200_v25 = vmul.f32 %v1199_v49, %v3803_v30  ;;  %v3815_v49 = vld [vmem:[#allocation36_spill] sm:$0xff] }
 0x157   : > { %vm1215_vm0 = vcmp.eq.f32.partialorder %v2868_v28, 0.0  ;;  %v1223_v27 = vmul.f32 %v3807_v43, %v1222_v50  ;;  %v1245_v55 = vmul.f32 0.5, %v1244_v22  ;;  %v1212_v51 = vmul.f32 %v1211_v31, %v2868_v28  ;;  %v3816_v43 = vld [vmem:[#allocation38_spill] sm:$0xff]  ;;  %v3817_v31 = vld [vmem:[#allocation29_spill] sm:$0xff] }
 0x158   : > { %v1216_v52 = vand.u32 2147483648, %v2868_v28  ;;  %vm1225_vm1 = vcmp.eq.f32.partialorder %v3814_v53, inf  ;;  %v1256_v4 = vmul.f32 %v3813_v34, %v1255_v40  ;;  %v3327_v32 = vsel %vm1179_vm10, %v1180_v13, %v1178_v2 }
 0x159   : > { %vm1227_vm2 = vcmp.eq.f32.partialorder %v3814_v53, 0.0  ;;  %v1235_v17 = vmul.f32 %v3811_v20, %v1234_v23  ;;  %v1246_v39 = vsub.f32 1.5, %v1245_v55  ;;  %v1267_v50 = vmul.f32 %v3816_v43, %v3815_v49 }
 0x15a   : > { %v3335_v19 = vsel %vm1191_vm12, %v1192_v18, %v1190_v36  ;;  %v1228_v16 = vand.u32 2147483648, %v3814_v53  ;;  %vm1237_vm3 = vcmp.eq.f32.partialorder %v3817_v31, inf  ;;  %v1257_v22 = vmul.f32 0.5, %v1256_v4 }
 0x15b   : > { %v1202_v10 = vsel %vm1201_vm13, %v3803_v30, %v1200_v25  ;;  %v1224_v13 = vmul.f32 %v1223_v27, %v3814_v53  ;;  %v1268_v20 = vmul.f32 %v3816_v43, %v1267_v50  ;;  %v1279_v23 = vmul.f32 %v3084_v0, %v3025_v3 }
 0x15c   : > { %v1214_v26 = vsel %vm1213_vm15, %v2868_v28, %v1212_v51  ;;  %vm1239_vm4 = vcmp.eq.f32.partialorder %v3817_v31, 0.0  ;;  %v1240_v18 = vand.u32 2147483648, %v3817_v31  ;;  %v1258_v2 = vsub.f32 1.5, %v1257_v22 }
 0x15d   : > { %v1236_v40 = vmul.f32 %v1235_v17, %v3817_v31  ;;  %v1247_v36 = vmul.f32 %v3047_v12, %v1246_v39  ;;  %v1269_v25 = vmul.f32 0.5, %v1268_v20  ;;  %v1280_v27 = vmul.f32 %v3084_v0, %v1279_v23 }
 0x15e   : > { %v3356_v55 = vsel %vm1203_vm14, %v1204_v6, %v1202_v10  ;;  %vm1249_vm5 = vcmp.eq.f32.partialorder %v2984_v5, inf  ;;  %v1252_v51 = vand.u32 2147483648, %v2984_v5  ;;  %v1291_v4 = vmul.f32 %v3057_v45, %v2990_v62 }
 0x15f   : > { %v1226_v17 = vsel %vm1225_vm1, %v3814_v53, %v1224_v13  ;;  %vm1251_vm6 = vcmp.eq.f32.partialorder %v2984_v5, 0.0  ;;  %v1259_v12 = vmul.f32 %v3813_v34, %v1258_v2  ;;  %v1270_v39 = vsub.f32 1.5, %v1269_v25 }
 0x160   : > { %v1281_v50 = vmul.f32 0.5, %v1280_v27  ;;  %v3369_v30 = vsel %vm1215_vm0, %v1216_v52, %v1214_v26  ;;  %vm1261_vm7 = vcmp.eq.f32.partialorder %v3812_v1, inf  ;;  %v1292_v6 = vmul.f32 %v3057_v45, %v1291_v4 }
 0x161   : > { %v1303_v22 = vmul.f32 %v3067_v58, %v2999_v9  ;;  %v1238_v10 = vsel %vm1237_vm3, %v3817_v31, %v1236_v40  ;;  %v1248_v13 = vmul.f32 %v1247_v36, %v2984_v5  ;;  %vm1263_vm8 = vcmp.eq.f32.partialorder %v3812_v1, 0.0 }
 0x162   : > { %v1264_v34 = vand.u32 2147483648, %v3812_v1  ;;  %v1282_v28 = vsub.f32 1.5, %v1281_v50  ;;  %v3383_v52 = vsel %vm1227_vm2, %v1228_v16, %v1226_v17  ;;  %v1271_v20 = vmul.f32 %v3816_v43, %v1270_v39 }
 0x163   : > { %v1293_v23 = vmul.f32 0.5, %v1292_v6  ;;  %v1304_v26 = vmul.f32 %v3067_v58, %v1303_v22  ;;  %v1260_v2 = vmul.f32 %v1259_v12, %v3812_v1  ;;  %vm1273_vm9 = vcmp.eq.f32.partialorder %v3815_v49, inf }
 0x164   : > { %v1276_v40 = vand.u32 2147483648, %v3815_v49  ;;  %v1315_v36 = vmul.f32 %v3122_v48, %v3062_v47  ;;  %v3394_v25 = vsel %vm1239_vm4, %v1240_v18, %v1238_v10  ;;  %vm1275_vm10 = vcmp.eq.f32.partialorder %v3815_v49, 0.0 }
 0x165   : > { %v1283_v53 = vmul.f32 %v3084_v0, %v1282_v28  ;;  %v1294_v43 = vsub.f32 1.5, %v1293_v23  ;;  %v1305_v16 = vmul.f32 0.5, %v1304_v26  ;;  %v1250_v27 = vsel %vm1249_vm5, %v2984_v5, %v1248_v13 }
 0x166   : > { %vm1285_vm11 = vcmp.eq.f32.partialorder %v3025_v3, inf  ;;  %v1288_v4 = vand.u32 2147483648, %v3025_v3  ;;  %v1316_v17 = vmul.f32 %v3122_v48, %v1315_v36  ;;  %v1272_v31 = vmul.f32 %v1271_v20, %v3815_v49 }
 0x167   : > { %vm1287_vm12 = vcmp.eq.f32.partialorder %v3025_v3, 0.0  ;;  %v1295_v18 = vmul.f32 %v3057_v45, %v1294_v43  ;;  %v1306_v12 = vsub.f32 1.5, %v1305_v16  ;;  %v1327_v0 = vmul.f32 %v3096_v61, %v3029_v37 }
 0x168   : > { %v1262_v39 = vsel %vm1261_vm7, %v3812_v1, %v1260_v2  ;;  %vm1297_vm13 = vcmp.eq.f32.partialorder %v2990_v62, inf  ;;  %v1300_v50 = vand.u32 2147483648, %v2990_v62  ;;  %v1317_v6 = vmul.f32 0.5, %v1316_v17 }
 0x169   : > { %v3416_v22 = vsel %vm1251_vm6, %v1252_v51, %v1250_v27  ;;  %v1284_v10 = vmul.f32 %v1283_v53, %v3025_v3  ;;  %vm1299_vm14 = vcmp.eq.f32.partialorder %v2990_v62, 0.0  ;;  %v1307_v45 = vmul.f32 %v3067_v58, %v1306_v12 }
 0x16a   : > { %v1328_v13 = vmul.f32 %v3096_v61, %v1327_v0  ;;  %v1296_v28 = vmul.f32 %v1295_v18, %v2990_v62  ;;  %vm1309_vm15 = vcmp.eq.f32.partialorder %v2999_v9, inf  ;;  %v1318_v20 = vsub.f32 1.5, %v1317_v6 }
 0x16b   : > { %v1339_v23 = vmul.f32 %v3106_v21, %v3054_v59  ;;  %v3428_v5 = vsel %vm1263_vm8, %v1264_v34, %v1262_v39  ;;  %v1274_v51 = vsel %vm1273_vm9, %v3815_v49, %v1272_v31  ;;  %vm1311_vm0 = vcmp.eq.f32.partialorder %v2999_v9, 0.0 }
 0x16c   : > { %v1312_v58 = vand.u32 2147483648, %v2999_v9  ;;  %v1329_v26 = vmul.f32 0.5, %v1328_v13  ;;  %v1319_v2 = vmul.f32 %v3122_v48, %v1318_v20  ;;  %vm1321_vm1 = vcmp.eq.f32.partialorder %v3062_v47, inf }
 0x16d   : > { %v1324_v36 = vand.u32 2147483648, %v3062_v47  ;;  %v1340_v53 = vmul.f32 %v3106_v21, %v1339_v23  ;;  %v1286_v1 = vsel %vm1285_vm11, %v3025_v3, %v1284_v10  ;;  %v1308_v34 = vmul.f32 %v1307_v45, %v2999_v9 }
 0x16e   : > { %vm1323_vm2 = vcmp.eq.f32.partialorder %v3062_v47, 0.0  ;;  %v1330_v43 = vsub.f32 1.5, %v1329_v26  ;;  %v1351_v16 = vmul.f32 %v3204_v38, %v3144_v35  ;;  %v3448_v48 = vsel %vm1275_vm10, %v1276_v40, %v1274_v51 }
 0x16f   : > { %v1298_v27 = vsel %vm1297_vm13, %v2990_v62, %v1296_v28  ;;  %vm1333_vm3 = vcmp.eq.f32.partialorder %v3029_v37, inf  ;;  %v1341_v17 = vmul.f32 0.5, %v1340_v53  ;;  %v1320_v31 = vmul.f32 %v1319_v2, %v3062_v47 }
 0x170   : > { %v1331_v18 = vmul.f32 %v3096_v61, %v1330_v43  ;;  %v1352_v12 = vmul.f32 %v3204_v38, %v1351_v16  ;;  %v1363_v0 = vmul.f32 %v3140_v24, %v3080_v63  ;;  %v3461_v49 = vsel %vm1287_vm12, %v1288_v4, %v1286_v1 }
 0x171   : > { %vm1335_vm4 = vcmp.eq.f32.partialorder %v3029_v37, 0.0  ;;  %v1336_v40 = vand.u32 2147483648, %v3029_v37  ;;  %v1342_v39 = vsub.f32 1.5, %v1341_v17  ;;  %v1310_v6 = vsel %vm1309_vm15, %v2999_v9, %v1308_v34 }
 0x172   : > { %vm1345_vm5 = vcmp.eq.f32.partialorder %v3054_v59, inf  ;;  %v1353_v61 = vmul.f32 0.5, %v1352_v12  ;;  %v1364_v10 = vmul.f32 %v3140_v24, %v1363_v0  ;;  %v3472_v45 = vsel %vm1299_vm14, %v1300_v50, %v1298_v27 }
 0x173   : > { %v1332_v3 = vmul.f32 %v1331_v18, %v3029_v37  ;;  %v1343_v4 = vmul.f32 %v3106_v21, %v1342_v39  ;;  %v1375_v13 = vmul.f32 %v3171_v44, %v3110_v46  ;;  %v1322_v28 = vsel %vm1321_vm1, %v3062_v47, %v1320_v31 }
 0x174   : > { %v1348_v20 = vand.u32 2147483648, %v3054_v59  ;;  %v1354_v23 = vsub.f32 1.5, %v1353_v61  ;;  %v1365_v51 = vmul.f32 0.5, %v1364_v10  ;;  %v3484_v62 = vsel %vm1311_vm0, %v1312_v58, %v1310_v6 }
 0x175   : > { %vm1347_vm6 = vcmp.eq.f32.partialorder %v3054_v59, 0.0  ;;  %vm1357_vm7 = vcmp.eq.f32.partialorder %v3144_v35, inf  ;;  %v1360_v21 = vand.u32 2147483648, %v3144_v35  ;;  %v1376_v50 = vmul.f32 %v3171_v44, %v1375_v13 }
 0x176   : > { %v1355_v26 = vmul.f32 %v3204_v38, %v1354_v23  ;;  %v1366_v2 = vsub.f32 1.5, %v1365_v51  ;;  %vm1369_vm8 = vcmp.eq.f32.partialorder %v3080_v63, inf  ;;  %v1387_v53 = vmul.f32 %v3223_v8, %v3175_v15 }
 0x177   : > { %v1325_v9 = vsel %vm1323_vm2, %v1324_v36, %v1322_v28  ;;  %v1334_v58 = vsel %vm1333_vm3, %v3029_v37, %v1332_v3  ;;  %v1344_v1 = vmul.f32 %v1343_v4, %v3054_v59  ;;  %vm1359_vm9 = vcmp.eq.f32.partialorder %v3144_v35, 0.0  ;;  %v3818_v37 = vld [vmem:[#allocation19_spill] sm:$0xff] }
 0x178   : > { %vm1371_vm10 = vcmp.eq.f32.partialorder %v3080_v63, 0.0  ;;  %v1377_v38 = vmul.f32 0.5, %v1376_v50  ;;  %v1367_v34 = vmul.f32 %v3140_v24, %v1366_v2  ;;  %v1372_v43 = vand.u32 2147483648, %v3080_v63  ;;  %v3820_v50 = vld [vmem:[#allocation22_spill] sm:$0xff] }
 0x179   : > { %vm1381_vm11 = vcmp.eq.f32.partialorder %v3110_v46, inf  ;;  %v1388_v47 = vmul.f32 %v3223_v8, %v1387_v53  ;;  %v1356_v36 = vmul.f32 %v1355_v26, %v3144_v35  ;;  %vm1383_vm12 = vcmp.eq.f32.partialorder %v3110_v46, 0.0 }
 0x17a   : > { %v1378_v16 = vsub.f32 1.5, %v1377_v38  ;;  %v1399_v27 = vmul.f32 %v3213_v29, %v3161_v41  ;;  %v1337_v17 = vsel %vm1335_vm4, %v1336_v40, %v1334_v58  ;;  %v1368_v31 = vmul.f32 %v1367_v34, %v3080_v63 }
 0x17b   : > { %v1384_v24 = vand.u32 2147483648, %v3110_v46  ;;  %v1389_v18 = vmul.f32 0.5, %v1388_v47  ;;  %v1346_v12 = vsel %vm1345_vm5, %v3054_v59, %v1344_v1  ;;  %v3521_v6 = vpack.c.bf16 %v3118_v42, %v3116_v33 }
 0x17c   : > { %v1379_v0 = vmul.f32 %v3171_v44, %v1378_v16  ;;  %v1400_v39 = vmul.f32 %v3213_v29, %v1399_v27  ;;  %vm1393_vm13 = vcmp.eq.f32.partialorder %v3175_v15, inf  ;;  %vm1395_vm14 = vcmp.eq.f32.partialorder %v3175_v15, 0.0 }
 0x17d   : > { %v1390_v61 = vsub.f32 1.5, %v1389_v18  ;;  %v3527_v40 = vpack.c.bf16 %v3818_v37, %v3177_v60  ;;  %v1358_v10 = vsel %vm1357_vm7, %v3144_v35, %v1356_v36  ;;  %v1370_v44 = vsel %vm1369_vm8, %v3080_v63, %v1368_v31 }
 0x17e   : > { %v1380_v33 = vmul.f32 %v1379_v0, %v3110_v46  ;;  %v1401_v42 = vmul.f32 0.5, %v1400_v39  ;;  %v1349_v3 = vsel %vm1347_vm6, %v1348_v20, %v1346_v12  ;;  %v1396_v13 = vand.u32 2147483648, %v3175_v15  ;;  %v3819_v20 = vld [vmem:[#allocation39_spill] sm:$0xff] }
 0x17f   : > { %v1391_v4 = vmul.f32 %v3223_v8, %v1390_v61  ;;  %vm1405_vm15 = vcmp.eq.f32.partialorder %v3161_v41, inf  ;;  %vm1407_vm0 = vcmp.eq.f32.partialorder %v3161_v41, 0.0  ;;  %v1408_v23 = vand.u32 2147483648, %v3161_v41 }
 0x180   : > { %v1382_v60 = vsel %vm1381_vm11, %v3110_v46, %v1380_v33  ;;  %v1402_v28 = vsub.f32 1.5, %v1401_v42  ;;  %v1361_v51 = vsel %vm1359_vm9, %v1360_v21, %v1358_v10  ;;  %v1373_v59 = vsel %vm1371_vm10, %v1372_v43, %v1370_v44 }
 0x181   : > { %v1392_v8 = vmul.f32 %v1391_v4, %v3175_v15  ;;  %v3553_v26 = vpack.c.bf16 %v3820_v50, %v3819_v20  ;;  %v1385_v2 = vsel %vm1383_vm12, %v1384_v24, %v1382_v60  ;;  %v3560_v58 = vpack.c.bf16 %v3275_v54, %v3246_v14 }
 0x182   : > { %v1403_v53 = vmul.f32 %v3213_v29, %v1402_v28  ;;  %v3564_v35 = vpack.c.bf16 %v3270_v7, %v3258_v57  ;;  %v3571_v21 = vpack.c.bf16 %v3307_v56, %v3300_v11  ;;  %v3575_v46 = vpack.c.bf16 %v3335_v19, %v3327_v32 }
 0x183   : > { %v1394_v63 = vsel %vm1393_vm13, %v3175_v15, %v1392_v8  ;;  %v3579_v29 = vpack.c.bf16 %v3369_v30, %v3356_v55  ;;  %v3584_v57 = vpack.c.bf16 %v3394_v25, %v3383_v52  ;;  %v3588_v7 = vpack.c.bf16 %v3428_v5, %v3416_v22 }
 0x184   : > { %v1404_v14 = vmul.f32 %v1403_v53, %v3161_v41  ;;  %v3592_v54 = vpack.c.bf16 %v3461_v49, %v3448_v48  ;;  %v3596_v11 = vpack.c.bf16 %v3484_v62, %v3472_v45  ;;  %v3598_v56 = vpack.c.bf16 %v1337_v17, %v1325_v9 }
 0x185   : > { %v3600_v32 = vpack.c.bf16 %v1361_v51, %v1349_v3  ;;  %v3602_v19 = vpack.c.bf16 %v1385_v2, %v1373_v59  ;;  %v1397_v55 = vsel %vm1395_vm14, %v1396_v13, %v1394_v63  ;;  %v1452_v52 = vunpack.c.l.b16 %v3521_v6 }
 0x186   : > { %v1406_v30 = vsel %vm1405_vm15, %v3161_v41, %v1404_v14  ;;  %v1453_v25 = vunpack.c.h.b16 %v3521_v6  ;;  %v1454_v5 = vunpack.c.l.b16 %v3553_v26  ;;  %v1455_v48 = vunpack.c.h.b16 %v3553_v26 }
 0x187   : > { %v1409_v22 = vsel %vm1407_vm0, %v1408_v23, %v1406_v30  ;;  %v1456_v49 = vunpack.c.l.b16 %v3527_v40  ;;  %v1457_v15 = vunpack.c.h.b16 %v3527_v40  ;;  %v1458_v45 = vunpack.c.l.b16 %v3560_v58 }
 0x188   : > { %v1459_v62 = vunpack.c.h.b16 %v3560_v58  ;;  %v1460_v9 = vunpack.c.l.b16 %v3564_v35  ;;  %v1461_v1 = vunpack.c.h.b16 %v3564_v35  ;;  %v1462_v38 = vunpack.c.l.b16 %v3571_v21 }
 0x189   : > { %v1463_v41 = vunpack.c.h.b16 %v3571_v21  ;;  %v1464_v34 = vunpack.c.l.b16 %v3575_v46  ;;  %v3624_v43 = vpack.c.bf16 %v1409_v22, %v1397_v55  ;;  %v1465_v47 = vunpack.c.h.b16 %v3575_v46 }
 0x18a   : > { %v1466_v36 = vunpack.c.l.b16 %v3579_v29  ;;  %v1467_v16 = vunpack.c.h.b16 %v3579_v29  ;;  %v1468_v27 = vunpack.c.l.b16 %v3584_v57  ;;  %v1469_v17 = vunpack.c.h.b16 %v3584_v57 }
 0x18b   : > { %v1470_v31 = vunpack.c.l.b16 %v3588_v7  ;;  %v1471_v24 = vunpack.c.h.b16 %v3588_v7  ;;  %v1472_v18 = vunpack.c.l.b16 %v3592_v54  ;;  %v1473_v12 = vunpack.c.h.b16 %v3592_v54 }
 0x18c   : > { %v1474_v0 = vunpack.c.l.b16 %v3596_v11  ;;  %v1484_v39 = vlaneseq  ;;  %v1475_v6 = vunpack.c.h.b16 %v3596_v11  ;;  %v1476_v61 = vunpack.c.l.b16 %v3598_v56 }
 0x18d   : > { %v1477_v37 = vunpack.c.h.b16 %v3598_v56  ;;  %v1478_v40 = vunpack.c.l.b16 %v3600_v32  ;;  %v1479_v10 = vunpack.c.h.b16 %v3600_v32  ;;  %v1480_v44 = vunpack.c.l.b16 %v3602_v19 }
 0x18e   : > { %v1481_v33 = vunpack.c.h.b16 %v3602_v19  ;;  %v1485_v42 = vand.u32 127, %v1484_v39  ;;  %v1482_v3 = vunpack.c.l.b16 %v3624_v43  ;;  %v1483_v4 = vunpack.c.h.b16 %v3624_v43 }
 0x18f   : > { %vm1489_vm1 = vcmask 130112   ;;  %vm1493_vm2 = vcmask 195712   ;;  %vm1497_vm3 = vcmask 261312   ;;  %vm1548_vm4 = vcmask 1041409  }
 0x190   : > { %v1486_v13 = vperm.slane %v1452_v52, %v1485_v42  ;;  %v1487_v60 = vadd.s32 4294967288, %v1485_v42  ;;  %v1491_v28 = vadd.s32 4294967280, %v1485_v42  ;;  %v1495_v23 = vadd.s32 4294967272, %v1485_v42 }
 0x191   : > { %v1499_v51 = vperm.slane %v1456_v49, %v1485_v42  ;;  %v1506_v59 = vperm.slane %v1460_v9, %v1485_v42  ;;  %v1513_v8 = vperm.slane %v1464_v34, %v1485_v42  ;;  %v1520_v2 = vperm.slane %v1468_v27, %v1485_v42 }
 0x192   : > { %v1488_v20 = vperm.slane %v1453_v25, %v1487_v60  ;;  %v1492_v50 = vperm.slane %v1454_v5, %v1491_v28  ;;  %v1500_v26 = vperm.slane %v1457_v15, %v1487_v60  ;;  %v1502_v53 = vperm.slane %v1458_v45, %v1491_v28 }
 0x193   : > { %v1504_v58 = vperm.slane %v1459_v62, %v1495_v23  ;;  %v1507_v35 = vperm.slane %v1461_v1, %v1487_v60  ;;  %v1509_v63 = vperm.slane %v1462_v38, %v1491_v28  ;;  %vm1550_vm5 = vcmask 1042434  }
 0x194   : > { %v1490_v21 = vsel %vm1489_vm1, %v1488_v20, %v1486_v13  ;;  %v1496_v46 = vperm.slane %v1455_v48, %v1495_v23  ;;  %v1501_v29 = vsel %vm1489_vm1, %v1500_v26, %v1499_v51  ;;  %v1514_v14 = vperm.slane %v1465_v47, %v1487_v60 }
 0x195   : > { %vm1552_vm6 = vcmask 1043459   ;;  %v1494_v57 = vsel %vm1493_vm2, %v1492_v50, %v1490_v21  ;;  %v1503_v7 = vsel %vm1493_vm2, %v1502_v53, %v1501_v29  ;;  %v1508_v54 = vsel %vm1489_vm1, %v1507_v35, %v1506_v59 }
 0x196   : > { %v1516_v11 = vperm.slane %v1466_v36, %v1491_v28  ;;  %vm1554_vm7 = vcmask 1044484   ;;  %v1498_v56 = vsel %vm1497_vm3, %v1496_v46, %v1494_v57  ;;  %v1510_v32 = vsel %vm1493_vm2, %v1509_v63, %v1508_v54 }
 0x197   : > { %v1511_v19 = vperm.slane %v1463_v41, %v1495_v23  ;;  %v1515_v55 = vsel %vm1489_vm1, %v1514_v14, %v1513_v8  ;;  %v1505_v30 = vsel %vm1497_vm3, %v1504_v58, %v1503_v7  ;;  %v1518_v25 = vperm.slane %v1467_v16, %v1495_v23 }
 0x198   : > { %v1517_v52 = vsel %vm1493_vm2, %v1516_v11, %v1515_v55  ;;  %v1521_v22 = vperm.slane %v1469_v17, %v1487_v60  ;;  %v1523_v5 = vperm.slane %v1470_v31, %v1491_v28  ;;  %v1525_v48 = vperm.slane %v1471_v24, %v1495_v23 }
 0x199   : > { %v1527_v49 = vperm.slane %v1472_v18, %v1485_v42  ;;  %v1528_v15 = vperm.slane %v1473_v12, %v1487_v60  ;;  %v1512_v45 = vsel %vm1497_vm3, %v1511_v19, %v1510_v32  ;;  %v1519_v62 = vsel %vm1497_vm3, %v1518_v25, %v1517_v52 }
 0x19a   : > { %v1522_v9 = vsel %vm1489_vm1, %v1521_v22, %v1520_v2  ;;  %v1530_v1 = vperm.slane %v1474_v0, %v1491_v28  ;;  %v1534_v34 = vperm.slane %v1476_v61, %v1485_v42  ;;  %v1535_v43 = vperm.slane %v1477_v37, %v1487_v60 }
 0x19b   : > { %v1524_v38 = vsel %vm1493_vm2, %v1523_v5, %v1522_v9  ;;  %v1529_v41 = vsel %vm1489_vm1, %v1528_v15, %v1527_v49  ;;  %v1532_v36 = vperm.slane %v1475_v6, %v1495_v23  ;;  %v1537_v16 = vperm.slane %v1478_v40, %v1491_v28 }
 0x19c   : > { %v1531_v47 = vsel %vm1493_vm2, %v1530_v1, %v1529_v41  ;;  %v1539_v27 = vperm.slane %v1479_v10, %v1495_v23  ;;  %v1526_v17 = vsel %vm1497_vm3, %v1525_v48, %v1524_v38  ;;  %v1536_v31 = vsel %vm1489_vm1, %v1535_v43, %v1534_v34 }
 0x19d   : > { %v1541_v24 = vperm.slane %v1480_v44, %v1485_v42  ;;  %v1542_v18 = vperm.slane %v1481_v33, %v1487_v60  ;;  %v1538_v12 = vsel %vm1493_vm2, %v1537_v16, %v1536_v31  ;;  %v1544_v0 = vperm.slane %v1482_v3, %v1491_v28 }
 0x19e   : > { %v1546_v39 = vperm.slane %v1483_v4, %v1495_v23  ;;  %v1549_v13 = vsel %vm1548_vm4, %v1505_v30, %v1498_v56  ;;  %v1533_v61 = vsel %vm1497_vm3, %v1532_v36, %v1531_v47  ;;  %vm1556_vm8 = vcmask 1045509   ;;  %v1430_v23 = vld [vmem:[#allocation7] sm:$0x3] }
 0x19f   : > { %v1543_v37 = vsel %vm1489_vm1, %v1542_v18, %v1541_v24  ;;  %v1551_v6 = vsel %vm1550_vm5, %v1512_v45, %v1549_v13  ;;  %v1540_v40 = vsel %vm1497_vm3, %v1539_v27, %v1538_v12  ;;  %vm1558_vm9 = vcmask 1046534  }
 0x1a0   : > { %v1545_v10 = vsel %vm1493_vm2, %v1544_v0, %v1543_v37  ;;  %v1553_v44 = vsel %vm1552_vm6, %v1519_v62, %v1551_v6  ;;  %vm1560_vm10 = vcmask 1047559   ;;  %vm1583_vm11 = vcmask 261120  }
 0x1a1   : > { %v1547_v33 = vsel %vm1497_vm3, %v1546_v39, %v1545_v10  ;;  %v1555_v42 = vsel %vm1554_vm7, %v1526_v17, %v1553_v44  ;;  %v1432_v51 = vperm.slane %v1430_v23, 0  ;;  %v1433_v59 = vperm.slane %v1430_v23, 1 }
 0x1a2   : > { %v1557_v3 = vsel %vm1556_vm8, %v1533_v61, %v1555_v42 }
 0x1a3   : > { %v1559_v4 = vsel %vm1558_vm9, %v1540_v40, %v1557_v3 }
 0x1a4   : > { %v1561_v60 = vsel %vm1560_vm10, %v1547_v33, %v1559_v4 }
 0x1a5   : > { %v1562_v28 = vpack.c.b16 %v1561_v60, %v1561_v60 }
 0x1a7   : > { %1769 = vmatmul.msk.bf16.vlgmr.msra.gmra.mxu0 %vm1583_vm11, %v1562_v28  ;;  %1770 = vmatmul.msk.bf16.vlgmr.msra.gmra.mxu1 %vm1583_vm11, %v1562_v28 }
 0x224   : > { %v1596_v8 = vpop.f32.mrf.mxu0  ;;  %v1609_v20 = vpop.f32.mrf.mxu1 }
 0x225   : > { %v1597_v50 = vadd.f32 %v1596_v8, %v1432_v51  ;;  %v1610_v26 = vadd.f32 %v1609_v20, %v1433_v59 }
 0x227   : > { %v1613_v2 = vmul.f32 %v1597_v50, %v1597_v50  ;;  %v1614_v53 = vmul.f32 %v1610_v26, %v1610_v26 }
 0x229   : > { %v1615_v58 = vadd.f32 %v1614_v53, %v1613_v2 }
 0x22b   : > { %1616 = vadd.xlane.f32.xlu2 %v1615_v58 }
 0x22c   : > { %v1598_v35 = vpop.f32.mrf.mxu0  ;;  %v1611_v63 = vpop.f32.mrf.mxu1 }
 0x29e   : > { %v1617_v21 = vpop.xlane.xlu2 %1616 }
 0x29f   : > { %v1618_v46 = vmax.f32 %v1617_v21, 1e-24 }
 0x2a1   : > { %1982 = vrsqrt.f32 %v1618_v46  ;;  %vm1625_vm13 = vweird.f32 %v1618_v46 }
 0x2a7   : > { %v1983_v29 = vpop.eup %1982 }
 0x2a8   : > { %v1620_v14 = vmul.f32 %v1983_v29, %v1618_v46  ;;  %vm1626_vm12 = vweird.f32 %v1983_v29 }
 0x2a9   : > { %vm1627_vm14 = vmor %vm1625_vm13, %vm1626_vm12 }
 0x2aa   : > { %v1621_v57 = vmul.f32 %v1983_v29, %v1620_v14 }
 0x2ac   : > { %v1622_v7 = vmul.f32 0.5, %v1621_v57 }
 0x2ae   : > { %v1623_v54 = vsub.f32 1.5, %v1622_v7 }
 0x2b0   : > { %v1624_v11 = vmul.f32 %v1983_v29, %v1623_v54 }
 0x2b2   : > { %v1628_v56 = vsel %vm1627_vm14, %v1983_v29, %v1624_v11 }
 0x2b3   : > { %v1629_v32 = vmul.f32 %v1628_v56, %v1597_v50  ;;  %v1630_v19 = vmul.f32 %v1628_v56, %v1610_v26 }
 0x2b5   : > { %1631 = vst [vmem:[%s222_s29] sm:$0xff] %v1629_v32 }
 0x2b6   : > { %1632 = vst [vmem:[%s222_s29 + $0x8] sm:$0xff] %v1630_v19 }
 0x2b7   : > { %2101 = shalt.err (!%p2098_p10)
}
 0x2b8   : > { %1793 = dma.vmem_to_hbm [thread:$0]  (%p2238_p3), %s1648_s4, 256, %s1650_s5, %s1634_s16  }
 0x2b9 PF: > { %s1661_s22 = sand.u32 1, %s2132_s12   ;;  %p3821_p12 = scmp.ge.s32.totalorder %s2144_s15, 2 }
 0x2ba   : > { %s1662_s25 = scalar_lea.sflag [#allocation4], %s1661_s22 }
 0x2bb   : > { %p1807_p13 = pnand %p3821_p12, %p2207_p6 }
 0x2bd   : > { %p1808_p0 = pneg %p1807_p13 }
 0x2bf   : > { %2127 = dma.done.wait (%p1808_p0), %s1662_s25, 256  }
 0x2c0   : > { %2129 = vsyncadd (%p1808_p0), %s1662_s25, 4294967040  ;;  %p17_p5 = scmp.ge.s32.totalorder %s2228_s6, 4   ;;  %s3822_s12 = smov %s2136_s13 }
 0x2c1   : > { %s3823_s13 = smov %s2140_s14  ;;  %s3824_s14 = smov %s2244_s10 }
 0x2c2   : > { %s3825_s15 = smov %s2228_s6  ;;  %19 = sbr.rel (!%p17_p5) target bundleno = 6 (0x6), region = 85 }
 0x2c7   :  { %1668 = vsyncpa [#allocation3], 1 }
 0x2c8   :  { %1670 = vsyncpa [#allocation3 + $0x1], 1 }
 0x2c9   :  { %1671 = vsyncpa [#allocation6], 1 }
 0x2ca   :  { %1672 = vsyncpa [#allocation4], 1 }
 0x2cb   :  { %1674 = vsyncpa [#allocation4 + $0x1], 1 }

</bundles_post_ra>
